<compile_context>
chip_gen: v7x
topology: tpu7x:2x2x1
jax: 0.10.0
libtpu: 0.0.40
codegen_flags: <defaults>
</compile_context>

<pallas_src>
import functools
import math

import numpy as np
import jax
import jax.numpy as jnp
from jax import lax
from jax.experimental import pallas as pl
from jax.experimental.pallas import tpu as pltpu


def _round_up(x, m):
    return (x + m - 1) // m * m


def _stride2_selection_np(h1, w1):
    """(hw2, hw1) 0/1 matrix implementing the stride-2 1x1-conv spatial subsample."""
    h2, w2 = (h1 - 1) // 2 + 1, (w1 - 1) // 2 + 1
    sel = np.zeros((h2 * w2, h1 * w1), np.float32)
    rows = np.arange(h2 * w2)
    src = (rows // w2) * (2 * w1) + (rows % w2) * 2
    sel[rows, src] = 1.0
    return sel


# ----------------------------------------------------------------------------
# Fused Pallas kernel: one grid step == one block of BB batch elements, all in VMEM.
# ----------------------------------------------------------------------------
def _style_encoder_kernel(*refs, self_style):
    f32, bf16 = jnp.float32, jnp.bfloat16
    if self_style:
        (xs_ref, w1_ref, b1_ref, sel_ref, w2_ref, b2_ref,
         wfc_ref, bfc_ref, out_ref) = refs
    else:
        (xs_ref, cv_ref, w1_ref, b1_ref, wl1_ref, bl1_ref, sel_ref,
         w2_ref, b2_ref, wl2_ref, bl2_ref, wfc_ref, bfc_ref, out_ref) = refs

    BB, hw1, _ = xs_ref.shape
    c1 = w1_ref.shape[1]
    c2 = w2_ref.shape[1]
    hw2 = sel_ref.shape[0] // BB

    def mxu(a, w_ref, b_ref):
        # bf16 operands, f32 accumulation on the MXU, f32 bias add.
        a = a if a.dtype == bf16 else a.astype(bf16)
        return jnp.dot(a, w_ref[...], preferred_element_type=f32) + b_ref[...]

    def context_attention(q, kv):
        # q: (BB, P, C) f32 query maps; kv: (BB, C) f32 (key == value in module).
        scale = 1.0 / float(kv.shape[-1]) ** 0.5            # 1/sqrt(K.size(-1))
        kv3 = kv[:, None, :]                                # (BB, 1, C)
        s = jnp.sum(q * kv3, axis=-1, keepdims=True) * scale    # (BB, P, 1)
        s = s - jnp.max(s, axis=1, keepdims=True)               # softmax over P
        e = jnp.exp(s)
        w_att = e / jnp.sum(e, axis=1, keepdims=True)
        return w_att * kv3                                      # (BB, P, C)

    # --- basic_conv1 (1x1 conv; stride-16 spatial subsample already ran in XLA).
    if xs_ref.shape[-1] == 1:
        # Cin == 1: VPU broadcast FMA, no MXU pass, no zero-padded contraction.
        x1 = (xs_ref[...].astype(f32) * w1_ref[...].astype(f32)[None, :, :]
              + b1_ref[...][None, :, :])                        # (BB, hw1, c1)
    else:
        # General Cin: zero-padded MXU matmul over flattened (BB*hw1) rows.
        x1 = mxu(xs_ref[...].reshape(BB * hw1, xs_ref.shape[-1]),
                 w1_ref, b1_ref).reshape(BB, hw1, c1)

    if not self_style:
        cv = cv_ref[...].reshape(BB, cv_ref.shape[-1])          # (BB, ctx_p) bf16
        x1 = context_attention(x1, mxu(cv, wl1_ref, bl1_ref))   # attention #1

    # --- stride-2 subsample: ONE block-diagonal 0/1 selection matmul, then conv2.
    x1s = jnp.dot(sel_ref[...], x1.reshape(BB * hw1, c1).astype(bf16),
                  preferred_element_type=f32)                   # (BB*hw2, c1)
    x2 = mxu(x1s, w2_ref, b2_ref).reshape(BB, hw2, c2)          # (BB, hw2, c2)
    if not self_style:
        x2 = context_attention(x2, mxu(cv, wl2_ref, bl2_ref))   # attention #2

    # --- AdaptiveAvgPool2d(1) -> fc -> F.normalize(dim=1); lane-dense rows.
    g = jnp.mean(x2, axis=1)                                    # (BB, c2)
    y = mxu(g, wfc_ref, bfc_ref)                                # (BB, c2)
    nrm = jnp.sqrt(jnp.sum(y * y, axis=-1, keepdims=True))
    out_ref[...] = (y / jnp.maximum(nrm, 1e-12)).reshape(BB, 1, c2)


# ----------------------------------------------------------------------------
# Wrapper: strided subsample in XLA, then a single pallas_call over batch blocks.
# ----------------------------------------------------------------------------
@functools.partial(jax.jit, static_argnames=("self_style", "num_steps"))
def style_encoder_forward(kp, x_nchw, context_vector=None, self_style=False,
                          num_steps=2):
    """StyleEncoder.forward.  x: NCHW like PyTorch; returns (B, style_ch)."""
    B, cin, H, W = x_nchw.shape
    c1 = kp["b1"].shape[-1]
    c2 = kp["w2"].shape[-1]
    ctx_p = kp["wl1"].shape[0]
    stride1 = 256 // 16                      # hard-coded in the PyTorch module

    if not self_style and context_vector is None:
        raise ValueError("context_vector is required when self_style=False")

    # Batch blocking: BB elements per grid step; >= 2 parallel steps keeps both
    # v7x TensorCores busy (use num_steps=1 on single-TC v5e/v6e).
    num_steps = max(1, min(int(num_steps), B))
    BB = -(-B // num_steps)
    B_pad = num_steps * BB

    # stride-16 1x1 conv == strided spatial subsample (XLA, so the kernel never
    # touches the full-resolution image) + channel mix inside the kernel.
    xs = jnp.transpose(x_nchw, (0, 2, 3, 1))[:, ::stride1, ::stride1, :]
    H1, W1 = xs.shape[1], xs.shape[2]
    hw1 = H1 * W1
    H2, W2 = (H1 - 1) // 2 + 1, (W1 - 1) // 2 + 1
    hw2 = H2 * W2

    cin_k = 1 if cin == 1 else _round_up(cin, 8)
    xs = xs.reshape(B, hw1, cin).astype(jnp.bfloat16)
    xs = jnp.pad(xs, ((0, B_pad - B), (0, 0), (0, cin_k - cin)))

    # Block-diagonal stride-2 selection matrix over a batch block: built with
    # numpy at trace time -> baked constant, no per-call XLA prologue work.
    sel = np.kron(np.eye(BB, dtype=np.float32), _stride2_selection_np(H1, W1))
    sel = jnp.asarray(sel, jnp.bfloat16)                        # (BB*hw2, BB*hw1)

    bspec = lambda shp: pl.BlockSpec(shp, lambda i: (i, 0, 0))   # per batch block
    wspec = lambda arr: pl.BlockSpec(arr.shape, lambda i: (0, 0))  # grid-invariant

    if self_style:
        args = (xs, kp["w1"], kp["b1"], sel, kp["w2"], kp["b2"],
                kp["wfc"], kp["bfc"])
        in_specs = [bspec((BB, hw1, cin_k))] + [wspec(a) for a in args[1:]]
    else:
        ctx = context_vector.shape[-1]
        cv = context_vector.reshape(B, 1, ctx).astype(jnp.bfloat16)
        cv = jnp.pad(cv, ((0, B_pad - B), (0, 0), (0, ctx_p - ctx)))
        args = (xs, cv, kp["w1"], kp["b1"], kp["wl1"], kp["bl1"], sel,
                kp["w2"], kp["b2"], kp["wl2"], kp["bl2"], kp["wfc"], kp["bfc"])
        in_specs = ([bspec((BB, hw1, cin_k)), bspec((BB, 1, ctx_p))]
                    + [wspec(a) for a in args[2:]])

    flops = (2 * B_pad * (hw1 * cin * c1 + hw2 * c1 * c2 + c2 * c2
                          + ctx_p * (c1 + c2))
             + 2 * num_steps * (BB * hw2) * (BB * hw1) * c1
             + 8 * B_pad * (hw1 * c1 + hw2 * c2))
    bytes_accessed = (sum(math.prod(a.shape) * a.dtype.itemsize for a in args)
                      + B_pad * c2 * 4)

    out = pl.pallas_call(
        functools.partial(_style_encoder_kernel, self_style=self_style),
        out_shape=jax.ShapeDtypeStruct((B_pad, 1, c2), jnp.float32),
        grid=(num_steps,),
        in_specs=in_specs,
        out_specs=pl.BlockSpec((BB, 1, c2), lambda i: (i, 0, 0)),
        compiler_params=pltpu.CompilerParams(
            dimension_semantics=("parallel",),        # batch blocks across TCs
            vmem_limit_bytes=4 * 1024 * 1024),        # true footprint << 1 MiB
        cost_estimate=pl.CostEstimate(
            flops=int(flops),
            transcendentals=int(B_pad * (hw1 + hw2 + 1)),
            bytes_accessed=int(bytes_accessed)),
    )(*args)
    return out.reshape(B_pad, c2)[:B]


# ----------------------------------------------------------------------------
# Parameter construction (PyTorch layout) + one-time conversion to kernel layout.
# ----------------------------------------------------------------------------
def init_params(key, input_ch, style_ch, ctx_dim=5):
    c1, c2 = style_ch // 2, style_ch
    ks = jax.random.split(key, 10)
    nrm = lambda k, s: 0.1 * jax.random.normal(k, s, jnp.float32)
    return dict(
        conv1_w=nrm(ks[0], (c1, input_ch, 1, 1)), conv1_b=nrm(ks[1], (c1,)),
        conv2_w=nrm(ks[2], (c2, c1, 1, 1)),       conv2_b=nrm(ks[3], (c2,)),
        lin1_w=nrm(ks[4], (c1, ctx_dim)),         lin1_b=nrm(ks[5], (c1,)),
        lin2_w=nrm(ks[6], (c2, ctx_dim)),         lin2_b=nrm(ks[7], (c2,)),
        fc_w=nrm(ks[8], (c2, c2)),                fc_b=nrm(ks[9], (c2,)),
    )


def prepare_params(p):
    """Transpose to (in, out); zero-pad small contraction dims; cast MXU weights bf16."""
    f32, bf16 = jnp.float32, jnp.bfloat16
    cin = p["conv1_w"].shape[1]
    ctx_p = _round_up(p["lin1_w"].shape[1], 8)
    pad_rows = lambda w, r: jnp.pad(w, ((0, r - w.shape[0]), (0, 0)))
    if cin == 1:
        # conv1 is a VPU broadcast FMA in the kernel -> keep its weight in f32.
        w1 = p["conv1_w"][:, :, 0, 0].T.astype(f32)              # (1, c1)
    else:
        w1 = pad_rows(p["conv1_w"][:, :, 0, 0].T, _round_up(cin, 8)).astype(bf16)
    return dict(
        w1=w1,
        b1=p["conv1_b"].reshape(1, -1).astype(f32),
        w2=p["conv2_w"][:, :, 0, 0].T.astype(bf16),
        b2=p["conv2_b"].reshape(1, -1).astype(f32),
        wl1=pad_rows(p["lin1_w"].T, ctx_p).astype(bf16),
        bl1=p["lin1_b"].reshape(1, -1).astype(f32),
        wl2=pad_rows(p["lin2_w"].T, ctx_p).astype(bf16),
        bl2=p["lin2_b"].reshape(1, -1).astype(f32),
        wfc=p["fc_w"].T.astype(bf16),
        bfc=p["fc_b"].reshape(1, -1).astype(f32),
    )


# ----------------------------------------------------------------------------
# Pure-JAX f32 reference (faithful to the PyTorch forward) for validation.
# ----------------------------------------------------------------------------
def reference_forward(p, x, context_vector=None, self_style=False):
    def conv1x1(x, w, b, stride):
        y = lax.conv_general_dilated(x, w, (stride, stride), "VALID",
                                     dimension_numbers=("NCHW", "OIHW", "NCHW"))
        return y + b.reshape(1, -1, 1, 1)

    def linear(v, w, b):
        return v @ w.T + b

    def context_attention(Q, KV):
        B, C, H, W = Q.shape
        q = jnp.transpose(Q.reshape(B, C, H * W), (0, 2, 1))            # (B, HW, C)
        scores = jnp.einsum("bqc,bkc->bqk", q, KV) / jnp.sqrt(jnp.float32(KV.shape[-1]))
        w_att = jax.nn.softmax(scores, axis=1)                          # over HW
        out = jnp.einsum("bqk,bkc->bqc", w_att, KV)
        return jnp.transpose(out, (0, 2, 1)).reshape(B, C, H, W)

    if self_style:
        x = conv1x1(x, p["conv1_w"], p["conv1_b"], 256 // 16)
        x = conv1x1(x, p["conv2_w"], p["conv2_b"], 2)
    else:
        q = conv1x1(x, p["conv1_w"], p["conv1_b"], 256 // 16)
        kv = linear(context_vector, p["lin1_w"], p["lin1_b"])[:, None, :]
        x = context_attention(q, kv)
        q = conv1x1(x, p["conv2_w"], p["conv2_b"], 2)
        kv = linear(context_vector, p["lin2_w"], p["lin2_b"])[:, None, :]
        x = context_attention(q, kv)

    g = jnp.mean(x, axis=(2, 3))                                        # GAP
    y = linear(g, p["fc_w"], p["fc_b"])
    n = jnp.sqrt(jnp.sum(y * y, axis=1, keepdims=True))
    return y / jnp.maximum(n, 1e-12)


# ----------------------------------------------------------------------------
if __name__ == "__main__":
    B = 4                    # two parallel grid steps of BB=2 batch elements
    INPUT_CH = 1
    STYLE_CH = 256           # conv1 -> 128 ch, conv2 -> 256 ch (lane-dense)
    H = W = 128              # stride-16 conv -> 8x8, stride-2 conv -> 4x4
    CTX = 5

    key = jax.random.PRNGKey(0)
    kx, kc, kp = jax.random.split(key, 3)
    x = jax.random.normal(kx, (B, INPUT_CH, H, W), jnp.float32)
    context_vector = jax.random.normal(kc, (B, CTX), jnp.float32)

    params = init_params(kp, INPUT_CH, STYLE_CH, CTX)
    kparams = prepare_params(params)

    # context-attention path (self_style=False)
    out = style_encoder_forward(kparams, x, context_vector, self_style=False)
    out = jax.block_until_ready(out)
    assert out.shape == (B, STYLE_CH), out.shape
    assert bool(jnp.all(jnp.isfinite(out)))
    ref = reference_forward(params, x, context_vector, self_style=False)
    assert bool(jnp.allclose(out, ref, atol=2e-2, rtol=2e-2)), \
        float(jnp.max(jnp.abs(out - ref)))

    # self-style path (two strided 1x1 convs, no attention)
    out2 = style_encoder_forward(kparams, x, None, self_style=True)
    out2 = jax.block_until_ready(out2)
    assert bool(jnp.all(jnp.isfinite(out2)))
    ref2 = reference_forward(params, x, None, self_style=True)
    assert bool(jnp.allclose(out2, ref2, atol=2e-2, rtol=2e-2)), \
        float(jnp.max(jnp.abs(out2 - ref2)))

    print("KERNEL_OK")
</pallas_src>

<mosaic_0001>
module attributes {stable_mosaic.version = 11 : i64} {
  func.func @_style_encoder_kernel(%arg0: i32, %arg1: memref<2x64x1xbf16, #tpu.memory_space<vmem>>, %arg2: memref<2x1x8xbf16, #tpu.memory_space<vmem>>, %arg3: memref<1x128xf32, #tpu.memory_space<vmem>>, %arg4: memref<1x128xf32, #tpu.memory_space<vmem>>, %arg5: memref<8x128xbf16, #tpu.memory_space<vmem>>, %arg6: memref<1x128xf32, #tpu.memory_space<vmem>>, %arg7: memref<32x128xbf16, #tpu.memory_space<vmem>>, %arg8: memref<128x256xbf16, #tpu.memory_space<vmem>>, %arg9: memref<1x256xf32, #tpu.memory_space<vmem>>, %arg10: memref<8x256xbf16, #tpu.memory_space<vmem>>, %arg11: memref<1x256xf32, #tpu.memory_space<vmem>>, %arg12: memref<256x256xbf16, #tpu.memory_space<vmem>>, %arg13: memref<1x256xf32, #tpu.memory_space<vmem>>, %arg14: memref<2x1x256xf32, #tpu.memory_space<vmem>>) attributes {dimension_semantics = [#tpu.dimension_semantics<parallel>], iteration_bounds = array<i64: 2>, scalar_prefetch = 0 : i64, scratch_operands = 0 : i64, tpu.core_type = #tpu.core_type<tc>, window_params = [{transform_indices = @transform_0, window_bounds = array<i64: 2, 64, 1>}, {transform_indices = @transform_1, window_bounds = array<i64: 2, 1, 8>}, {pipeline_mode = #tpu.pipeline_mode<synchronous>, transform_indices = @transform_2, window_bounds = array<i64: 1, 128>}, {pipeline_mode = #tpu.pipeline_mode<synchronous>, transform_indices = @transform_3, window_bounds = array<i64: 1, 128>}, {pipeline_mode = #tpu.pipeline_mode<synchronous>, transform_indices = @transform_4, window_bounds = array<i64: 8, 128>}, {pipeline_mode = #tpu.pipeline_mode<synchronous>, transform_indices = @transform_5, window_bounds = array<i64: 1, 128>}, {pipeline_mode = #tpu.pipeline_mode<synchronous>, transform_indices = @transform_6, window_bounds = array<i64: 32, 128>}, {pipeline_mode = #tpu.pipeline_mode<synchronous>, transform_indices = @transform_7, window_bounds = array<i64: 128, 256>}, {pipeline_mode = #tpu.pipeline_mode<synchronous>, transform_indices = @transform_8, window_bounds = array<i64: 1, 256>}, {pipeline_mode = #tpu.pipeline_mode<synchronous>, transform_indices = @transform_9, window_bounds = array<i64: 8, 256>}, {pipeline_mode = #tpu.pipeline_mode<synchronous>, transform_indices = @transform_10, window_bounds = array<i64: 1, 256>}, {pipeline_mode = #tpu.pipeline_mode<synchronous>, transform_indices = @transform_11, window_bounds = array<i64: 256, 256>}, {pipeline_mode = #tpu.pipeline_mode<synchronous>, transform_indices = @transform_12, window_bounds = array<i64: 1, 256>}, {transform_indices = @transform_13, window_bounds = array<i64: 2, 1, 256>}]} {
    %c0 = arith.constant 0 : index
    %c0_0 = arith.constant 0 : index
    %c0_1 = arith.constant 0 : index
    %0 = vector.load %arg1[%c0, %c0_0, %c0_1] : memref<2x64x1xbf16, #tpu.memory_space<vmem>>, vector<2x64x1xbf16>
    %1 = arith.extf %0 : vector<2x64x1xbf16> to vector<2x64x1xf32>
    %c0_2 = arith.constant 0 : index
    %c0_3 = arith.constant 0 : index
    %2 = vector.load %arg3[%c0_2, %c0_3] : memref<1x128xf32, #tpu.memory_space<vmem>>, vector<1x128xf32>
    %3 = vector.shape_cast %2 : vector<1x128xf32> to vector<1x1x128xf32>
    %4 = vector.broadcast %1 : vector<2x64x1xf32> to vector<2x64x128xf32>
    %5 = vector.broadcast %3 : vector<1x1x128xf32> to vector<2x64x128xf32>
    %6 = arith.mulf %4, %5 : vector<2x64x128xf32>
    %c0_4 = arith.constant 0 : index
    %c0_5 = arith.constant 0 : index
    %7 = vector.load %arg4[%c0_4, %c0_5] : memref<1x128xf32, #tpu.memory_space<vmem>>, vector<1x128xf32>
    %8 = vector.shape_cast %7 : vector<1x128xf32> to vector<1x1x128xf32>
    %9 = vector.broadcast %8 : vector<1x1x128xf32> to vector<2x64x128xf32>
    %10 = arith.addf %6, %9 : vector<2x64x128xf32>
    %c0_6 = arith.constant 0 : index
    %c0_7 = arith.constant 0 : index
    %c0_8 = arith.constant 0 : index
    %11 = vector.load %arg2[%c0_6, %c0_7, %c0_8] : memref<2x1x8xbf16, #tpu.memory_space<vmem>>, vector<2x1x8xbf16>
    %12 = vector.shape_cast %11 : vector<2x1x8xbf16> to vector<2x8xbf16>
    %c0_9 = arith.constant 0 : index
    %c0_10 = arith.constant 0 : index
    %13 = vector.load %arg5[%c0_9, %c0_10] : memref<8x128xbf16, #tpu.memory_space<vmem>>, vector<8x128xbf16>
    %cst = arith.constant dense<0.000000e+00> : vector<2x128xf32>
    %14 = tpu.matmul %12, %13, %cst {dimension_numbers = #tpu.dot_dimension_numbers<[1], [0], [0], [1], [0, 0, 1, 1], [], []>} : vector<2x8xbf16>, vector<8x128xbf16>, vector<2x128xf32> -> vector<2x128xf32>
    %c0_11 = arith.constant 0 : index
    %c0_12 = arith.constant 0 : index
    %15 = vector.load %arg6[%c0_11, %c0_12] : memref<1x128xf32, #tpu.memory_space<vmem>>, vector<1x128xf32>
    %16 = vector.broadcast %15 : vector<1x128xf32> to vector<2x128xf32>
    %17 = arith.addf %14, %16 : vector<2x128xf32>
    %18 = vector.shape_cast %17 : vector<2x128xf32> to vector<2x1x128xf32>
    %19 = vector.broadcast %18 : vector<2x1x128xf32> to vector<2x64x128xf32>
    %20 = arith.mulf %10, %19 : vector<2x64x128xf32>
    %cst_13 = arith.constant dense<0.000000e+00> : vector<2x64xf32>
    %21 = vector.multi_reduction <add>, %20, %cst_13 [2] : vector<2x64x128xf32> to vector<2x64xf32>
    %22 = vector.shape_cast %21 : vector<2x64xf32> to vector<2x64x1xf32>
    %cst_14 = arith.constant 0.0883883461 : f32
    %23 = vector.broadcast %cst_14 : f32 to vector<2x64x1xf32>
    %24 = arith.mulf %22, %23 : vector<2x64x1xf32>
    %cst_15 = arith.constant dense<0xFF800000> : vector<2x1xf32>
    %25 = vector.multi_reduction <maximumf>, %24, %cst_15 [1] : vector<2x64x1xf32> to vector<2x1xf32>
    %26 = vector.shape_cast %25 : vector<2x1xf32> to vector<2x1x1xf32>
    %27 = vector.broadcast %26 : vector<2x1x1xf32> to vector<2x64x1xf32>
    %28 = arith.subf %24, %27 : vector<2x64x1xf32>
    %29 = math.exp %28 : vector<2x64x1xf32>
    %cst_16 = arith.constant dense<0.000000e+00> : vector<2x1xf32>
    %30 = vector.multi_reduction <add>, %29, %cst_16 [1] : vector<2x64x1xf32> to vector<2x1xf32>
    %31 = vector.shape_cast %30 : vector<2x1xf32> to vector<2x1x1xf32>
    %32 = vector.broadcast %31 : vector<2x1x1xf32> to vector<2x64x1xf32>
    %33 = arith.divf %29, %32 : vector<2x64x1xf32>
    %34 = vector.broadcast %33 : vector<2x64x1xf32> to vector<2x64x128xf32>
    %35 = vector.broadcast %18 : vector<2x1x128xf32> to vector<2x64x128xf32>
    %36 = arith.mulf %34, %35 : vector<2x64x128xf32>
    %c0_17 = arith.constant 0 : index
    %c0_18 = arith.constant 0 : index
    %37 = vector.load %arg7[%c0_17, %c0_18] : memref<32x128xbf16, #tpu.memory_space<vmem>>, vector<32x128xbf16>
    %38 = vector.shape_cast %36 : vector<2x64x128xf32> to vector<128x128xf32>
    %39 = arith.truncf %38 : vector<128x128xf32> to vector<128x128xbf16>
    %cst_19 = arith.constant dense<0.000000e+00> : vector<32x128xf32>
    %40 = tpu.matmul %37, %39, %cst_19 {dimension_numbers = #tpu.dot_dimension_numbers<[1], [0], [0], [1], [0, 0, 1, 1], [], []>} : vector<32x128xbf16>, vector<128x128xbf16>, vector<32x128xf32> -> vector<32x128xf32>
    %41 = arith.truncf %40 : vector<32x128xf32> to vector<32x128xbf16>
    %c0_20 = arith.constant 0 : index
    %c0_21 = arith.constant 0 : index
    %42 = vector.load %arg8[%c0_20, %c0_21] : memref<128x256xbf16, #tpu.memory_space<vmem>>, vector<128x256xbf16>
    %cst_22 = arith.constant dense<0.000000e+00> : vector<32x256xf32>
    %43 = tpu.matmul %41, %42, %cst_22 {dimension_numbers = #tpu.dot_dimension_numbers<[1], [0], [0], [1], [0, 0, 1, 1], [], []>} : vector<32x128xbf16>, vector<128x256xbf16>, vector<32x256xf32> -> vector<32x256xf32>
    %c0_23 = arith.constant 0 : index
    %c0_24 = arith.constant 0 : index
    %44 = vector.load %arg9[%c0_23, %c0_24] : memref<1x256xf32, #tpu.memory_space<vmem>>, vector<1x256xf32>
    %45 = vector.broadcast %44 : vector<1x256xf32> to vector<32x256xf32>
    %46 = arith.addf %43, %45 : vector<32x256xf32>
    %47 = vector.shape_cast %46 : vector<32x256xf32> to vector<2x16x256xf32>
    %c0_25 = arith.constant 0 : index
    %c0_26 = arith.constant 0 : index
    %48 = vector.load %arg10[%c0_25, %c0_26] : memref<8x256xbf16, #tpu.memory_space<vmem>>, vector<8x256xbf16>
    %cst_27 = arith.constant dense<0.000000e+00> : vector<2x256xf32>
    %49 = tpu.matmul %12, %48, %cst_27 {dimension_numbers = #tpu.dot_dimension_numbers<[1], [0], [0], [1], [0, 0, 1, 1], [], []>} : vector<2x8xbf16>, vector<8x256xbf16>, vector<2x256xf32> -> vector<2x256xf32>
    %c0_28 = arith.constant 0 : index
    %c0_29 = arith.constant 0 : index
    %50 = vector.load %arg11[%c0_28, %c0_29] : memref<1x256xf32, #tpu.memory_space<vmem>>, vector<1x256xf32>
    %51 = vector.broadcast %50 : vector<1x256xf32> to vector<2x256xf32>
    %52 = arith.addf %49, %51 : vector<2x256xf32>
    %53 = vector.shape_cast %52 : vector<2x256xf32> to vector<2x1x256xf32>
    %54 = vector.broadcast %53 : vector<2x1x256xf32> to vector<2x16x256xf32>
    %55 = arith.mulf %47, %54 : vector<2x16x256xf32>
    %cst_30 = arith.constant dense<0.000000e+00> : vector<2x16xf32>
    %56 = vector.multi_reduction <add>, %55, %cst_30 [2] : vector<2x16x256xf32> to vector<2x16xf32>
    %57 = vector.shape_cast %56 : vector<2x16xf32> to vector<2x16x1xf32>
    %cst_31 = arith.constant 6.250000e-02 : f32
    %58 = vector.broadcast %cst_31 : f32 to vector<2x16x1xf32>
    %59 = arith.mulf %57, %58 : vector<2x16x1xf32>
    %cst_32 = arith.constant dense<0xFF800000> : vector<2x1xf32>
    %60 = vector.multi_reduction <maximumf>, %59, %cst_32 [1] : vector<2x16x1xf32> to vector<2x1xf32>
    %61 = vector.shape_cast %60 : vector<2x1xf32> to vector<2x1x1xf32>
    %62 = vector.broadcast %61 : vector<2x1x1xf32> to vector<2x16x1xf32>
    %63 = arith.subf %59, %62 : vector<2x16x1xf32>
    %64 = math.exp %63 : vector<2x16x1xf32>
    %cst_33 = arith.constant dense<0.000000e+00> : vector<2x1xf32>
    %65 = vector.multi_reduction <add>, %64, %cst_33 [1] : vector<2x16x1xf32> to vector<2x1xf32>
    %66 = vector.shape_cast %65 : vector<2x1xf32> to vector<2x1x1xf32>
    %67 = vector.broadcast %66 : vector<2x1x1xf32> to vector<2x16x1xf32>
    %68 = arith.divf %64, %67 : vector<2x16x1xf32>
    %69 = vector.broadcast %68 : vector<2x16x1xf32> to vector<2x16x256xf32>
    %70 = vector.broadcast %53 : vector<2x1x256xf32> to vector<2x16x256xf32>
    %71 = arith.mulf %69, %70 : vector<2x16x256xf32>
    %cst_34 = arith.constant dense<0.000000e+00> : vector<2x256xf32>
    %72 = vector.multi_reduction <add>, %71, %cst_34 [1] : vector<2x16x256xf32> to vector<2x256xf32>
    %cst_35 = arith.constant 1.600000e+01 : f32
    %73 = vector.broadcast %cst_35 : f32 to vector<2x256xf32>
    %74 = arith.divf %72, %73 : vector<2x256xf32>
    %75 = arith.truncf %74 : vector<2x256xf32> to vector<2x256xbf16>
    %c0_36 = arith.constant 0 : index
    %c0_37 = arith.constant 0 : index
    %76 = vector.load %arg12[%c0_36, %c0_37] : memref<256x256xbf16, #tpu.memory_space<vmem>>, vector<256x256xbf16>
    %cst_38 = arith.constant dense<0.000000e+00> : vector<2x256xf32>
    %77 = tpu.matmul %75, %76, %cst_38 {dimension_numbers = #tpu.dot_dimension_numbers<[1], [0], [0], [1], [0, 0, 1, 1], [], []>} : vector<2x256xbf16>, vector<256x256xbf16>, vector<2x256xf32> -> vector<2x256xf32>
    %c0_39 = arith.constant 0 : index
    %c0_40 = arith.constant 0 : index
    %78 = vector.load %arg13[%c0_39, %c0_40] : memref<1x256xf32, #tpu.memory_space<vmem>>, vector<1x256xf32>
    %79 = vector.broadcast %78 : vector<1x256xf32> to vector<2x256xf32>
    %80 = arith.addf %77, %79 : vector<2x256xf32>
    %81 = arith.mulf %80, %80 : vector<2x256xf32>
    %cst_41 = arith.constant dense<0.000000e+00> : vector<2xf32>
    %82 = vector.multi_reduction <add>, %81, %cst_41 [1] : vector<2x256xf32> to vector<2xf32>
    %83 = vector.shape_cast %82 : vector<2xf32> to vector<2x1xf32>
    %84 = math.sqrt %83 : vector<2x1xf32>
    %cst_42 = arith.constant 9.99999996E-13 : f32
    %85 = vector.broadcast %cst_42 : f32 to vector<2x1xf32>
    %86 = arith.maximumf %84, %85 : vector<2x1xf32>
    %87 = vector.broadcast %86 : vector<2x1xf32> to vector<2x256xf32>
    %88 = arith.divf %80, %87 : vector<2x256xf32>
    %89 = vector.shape_cast %88 : vector<2x256xf32> to vector<2x1x256xf32>
    %c0_43 = arith.constant 0 : index
    %c0_44 = arith.constant 0 : index
    %c0_45 = arith.constant 0 : index
    %90 = vector.load %arg14[%c0_43, %c0_44, %c0_45] : memref<2x1x256xf32, #tpu.memory_space<vmem>>, vector<2x1x256xf32>
    tpu.vector_store %arg14[%c0_43, %c0_44, %c0_45], %89 {strides = array<i32>} : memref<2x1x256xf32, #tpu.memory_space<vmem>>, vector<2x1x256xf32>,
    return
  }
  func.func @transform_0(%arg0: i32) -> (i32, i32, i32) {
    %c0_i32 = arith.constant 0 : i32
    %c0_i32_0 = arith.constant 0 : i32
    %c0_i32_1 = arith.constant 0 : i32
    return %arg0, %c0_i32, %c0_i32_0 : i32, i32, i32
  }
  func.func @transform_1(%arg0: i32) -> (i32, i32, i32) {
    %c0_i32 = arith.constant 0 : i32
    %c0_i32_0 = arith.constant 0 : i32
    %c0_i32_1 = arith.constant 0 : i32
    return %arg0, %c0_i32, %c0_i32_0 : i32, i32, i32
  }
  func.func @transform_2(%arg0: i32) -> (i32, i32) {
    %c0_i32 = arith.constant 0 : i32
    %c0_i32_0 = arith.constant 0 : i32
    %c0_i32_1 = arith.constant 0 : i32
    return %c0_i32, %c0_i32_0 : i32, i32
  }
  func.func @transform_3(%arg0: i32) -> (i32, i32) {
    %c0_i32 = arith.constant 0 : i32
    %c0_i32_0 = arith.constant 0 : i32
    %c0_i32_1 = arith.constant 0 : i32
    return %c0_i32, %c0_i32_0 : i32, i32
  }
  func.func @transform_4(%arg0: i32) -> (i32, i32) {
    %c0_i32 = arith.constant 0 : i32
    %c0_i32_0 = arith.constant 0 : i32
    %c0_i32_1 = arith.constant 0 : i32
    return %c0_i32, %c0_i32_0 : i32, i32
  }
  func.func @transform_5(%arg0: i32) -> (i32, i32) {
    %c0_i32 = arith.constant 0 : i32
    %c0_i32_0 = arith.constant 0 : i32
    %c0_i32_1 = arith.constant 0 : i32
    return %c0_i32, %c0_i32_0 : i32, i32
  }
  func.func @transform_6(%arg0: i32) -> (i32, i32) {
    %c0_i32 = arith.constant 0 : i32
    %c0_i32_0 = arith.constant 0 : i32
    %c0_i32_1 = arith.constant 0 : i32
    return %c0_i32, %c0_i32_0 : i32, i32
  }
  func.func @transform_7(%arg0: i32) -> (i32, i32) {
    %c0_i32 = arith.constant 0 : i32
    %c0_i32_0 = arith.constant 0 : i32
    %c0_i32_1 = arith.constant 0 : i32
    return %c0_i32, %c0_i32_0 : i32, i32
  }
  func.func @transform_8(%arg0: i32) -> (i32, i32) {
    %c0_i32 = arith.constant 0 : i32
    %c0_i32_0 = arith.constant 0 : i32
    %c0_i32_1 = arith.constant 0 : i32
    return %c0_i32, %c0_i32_0 : i32, i32
  }
  func.func @transform_9(%arg0: i32) -> (i32, i32) {
    %c0_i32 = arith.constant 0 : i32
    %c0_i32_0 = arith.constant 0 : i32
    %c0_i32_1 = arith.constant 0 : i32
    return %c0_i32, %c0_i32_0 : i32, i32
  }
  func.func @transform_10(%arg0: i32) -> (i32, i32) {
    %c0_i32 = arith.constant 0 : i32
    %c0_i32_0 = arith.constant 0 : i32
    %c0_i32_1 = arith.constant 0 : i32
    return %c0_i32, %c0_i32_0 : i32, i32
  }
  func.func @transform_11(%arg0: i32) -> (i32, i32) {
    %c0_i32 = arith.constant 0 : i32
    %c0_i32_0 = arith.constant 0 : i32
    %c0_i32_1 = arith.constant 0 : i32
    return %c0_i32, %c0_i32_0 : i32, i32
  }
  func.func @transform_12(%arg0: i32) -> (i32, i32) {
    %c0_i32 = arith.constant 0 : i32
    %c0_i32_0 = arith.constant 0 : i32
    %c0_i32_1 = arith.constant 0 : i32
    return %c0_i32, %c0_i32_0 : i32, i32
  }
  func.func @transform_13(%arg0: i32) -> (i32, i32, i32) {
    %c0_i32 = arith.constant 0 : i32
    %c0_i32_0 = arith.constant 0 : i32
    %c0_i32_1 = arith.constant 0 : i32
    return %arg0, %c0_i32, %c0_i32_0 : i32, i32, i32
  }
}

</mosaic_0001>

<bundles_post_ra>
// kernel: style_encoder_forward.1
= control target key start
LH: loop header
LB: loop body
LE: loop exit
PB: predicated region body
PF: predicated region fallthrough
CT: control target
= control target key end

     0   :  { %s2202_s25 = smov 0   ;;  %s2598_s0 = inlined_call_operand.vmem [shape: bf16[4,64,1], index: 0, kind: input, shape index: {}]   ;;  %s2599_s1 = inlined_call_operand.vmem [shape: bf16[4,1,8], index: 1, kind: input, shape index: {}]   ;;  %s2600_s2 = inlined_call_operand.vmem [shape: f32[1,128], index: 2, kind: input, shape index: {}]   ;;  %s2601_s3 = inlined_call_operand.vmem [shape: f32[1,128], index: 3, kind: input, shape index: {}]   ;;  %s2602_s4 = inlined_call_operand.vmem [shape: bf16[8,128], index: 4, kind: input, shape index: {}]   ;;  %s2603_s5 = inlined_call_operand.vmem [shape: f32[1,128], index: 5, kind: input, shape index: {}]   ;;  %s2604_s6 = inlined_call_operand.vmem [shape: bf16[32,128], index: 6, kind: input, shape index: {}]   ;;  %s2605_s7 = inlined_call_operand.vmem [shape: bf16[128,256], index: 7, kind: input, shape index: {}]   ;;  %s2606_s8 = inlined_call_operand.vmem [shape: f32[1,256], index: 8, kind: input, shape index: {}]   ;;  %s2607_s9 = inlined_call_operand.vmem [shape: bf16[8,256], index: 9, kind: input, shape index: {}]   ;;  %s2608_s10 = inlined_call_operand.vmem [shape: f32[1,256], index: 10, kind: input, shape index: {}]   ;;  %s2609_s11 = inlined_call_operand.vmem [shape: bf16[256,256], index: 11, kind: input, shape index: {}]   ;;  %s2610_s12 = inlined_call_operand.vmem [shape: f32[1,256], index: 12, kind: input, shape index: {}]   ;;  %s2611_s13 = inlined_call_operand.vmem [shape: f32[4,1,256], index: 13, kind: output, shape index: {}]  }
   0x1 LB: > { %s1787_s26 = sadd.s32 4294967295, %s2126_s25   ;;  %p1791_p0 = scmp.ge.s32.totalorder %s2126_s25, 1  ;;  %s2126_s25 = sphi %s2202_s25, %s23_s25  }
   0x2   : > { %p399_p1 = scmp.lt.s32.totalorder %s2126_s25, 3 }
   0x4   : > { %p400_p2 = pnand %p1791_p0, %p399_p1 }
   0x5   : > { %v627_v0 = vld [vmem:[%s2602_s4] sm:$0xf] (!%p400_p2)  ;;  %vm675_vm0 = vcmask (!%p400_p2), 1043456   ;;  %s1792_s29 = sshll.u32 (!%p400_p2), %s1787_s26, 1  ;;  %v647_v1 = vlaneseq (!%p400_p2)  ;;  %v2128_v2 = vmov (!%p400_p2), 0.0   ;;  %vm2129_vm1 = vmmov (!%p400_p2), 0  }
   0x6   : > { %403 = sbr.rel (%p400_p2) target bundleno = 1591 (0x637), region = 72  ;;  %1912 = vmatprep.subr.bf16.mxu0 (!%p400_p2), %v2128_v2  ;;  %v677_v3 = vsel (!%p400_p2), %vm675_vm0, %v627_v0, 0  ;;  %1914 = vmatprep.mubr.msk.bf16.mxu0 (!%p400_p2), %vm2129_vm1, %v2128_v2  ;;  %p449_p3 = scmp.lt.s32.totalorder (!%p400_p2), %s1792_s29, 3  ;;  %v2130_v4 = vmov (!%p400_p2), 1966171168   ;;  %v2131_v7 = vmov (!%p400_p2), 0  }
   0x7   : > { %1913 = vmatpush3.bf16.msra.mxu0 (!%p400_p2), %v677_v3  ;;  %v645_v5 = vunpack.c.l.s4 (!%p400_p2), %v2130_v4  ;;  %v2215_v6 = vshrl.u32 (!%p400_p2), %v647_v1, 7  ;;  %1950 = vset.pattern.permute.xlu0 (!%p400_p2), %v2131_v7  ;;  %vm668_vm2 = vcmask (!%p400_p2), 1041409   ;;  %vm671_vm3 = vcmask (!%p400_p2), 64512   ;;  %v2243_v55 = vld [vmem:[%s2600_s2] ss:$0 sm:$0xff] (!%p400_p2) }
   0x8   : > { %1961 = vset.pattern.permute.xlu1 (!%p400_p2), %v2131_v7  ;;  %v1800_v56 = vld [vmem:[%s2603_s5] ss:$0 sm:$0xff] (!%p400_p2)  ;;  %vm1672_vm4 = vcmask (!%p400_p2), 1041408   ;;  %vm1718_vm7 = vcmp.lt.s32.totalorder (!%p400_p2), %v647_v1, 256 }
   0x9   : > { %v646_v8 = vunpack.c.0.s8 (!%p400_p2), %v645_v5  ;;  %v2253_v3 = vld [vmem:[%s2601_s3] ss:$0 sm:$0xff] (!%p400_p2) }
   0xb   : > { %v2226_v10 = vsub.s32 (!%p400_p2), %v646_v8, %v2215_v6  ;;  %v2257_v8 = vsub.s32 (!%p400_p2), 0, %v2215_v6 }
   0xd   : > { %s2613_s29 = smov (!%p449_p3, %s1792_s29), 3 }
   0xe   : > { %s458_s15 = scalar_lea.vmem %s2599_s1, %s2613_s29  ;;  %s1860_s16 = sshll.u32 %s2613_s29, 5 }
   0xf   : > { %v1801_v9 = vld.sshfl [vmem:[%s458_s15] sm:$0x1 pattern:$0x75316420]  ;;  %s453_s19 = scalar_lea.vmem %s2598_s0, %s1860_s16  ;;  %s1797_s14 = sshll.u32 %s2613_s29, 1 }
  0x10   : > { %v1802_v11 = vld.sshfl [vmem:[%s458_s15 + $0x1] sm:$0x1 pattern:$0x75316420]  ;;  %v650_v12 = vrot.slane %v1801_v9, %v2226_v10  ;;  %v1894_v15 = vld [vmem:[%s453_s19 + $0x10] sm:$0xff]   ;;  %v1893_v16 = vld [vmem:[%s453_s19 + $0x8] sm:$0xff]   ;;  %s464_s17 = scalar_lea.vmem %s2611_s13, %s1797_s14 }
  0x11   : > { %v664_v13 = vrot.slane %v1802_v11, %v2226_v10  ;;  %v1862_v14 = vld [vmem:[%s453_s19] sm:$0xff]   ;;  %v1871_v19 = vunpack.c.l.bf16 %v1894_v15  ;;  %v1872_v20 = vunpack.c.h.bf16 %v1894_v15  ;;  %v1895_v21 = vld [vmem:[%s453_s19 + $0x18] sm:$0xff]   ;;  %v1867_v24 = vunpack.c.l.bf16 %v1893_v16  ;;  %v1897_v27 = vld [vmem:[%s453_s19 + $0x28] sm:$0xff]  }
  0x12   : > { %v1863_v17 = vunpack.c.l.bf16 %v1862_v14  ;;  %v1864_v18 = vunpack.c.h.bf16 %v1862_v14  ;;  %v665_v22 = vunpack.c.l.b16 %v650_v12  ;;  %v1868_v25 = vunpack.c.h.bf16 %v1893_v16  ;;  %v1896_v26 = vld [vmem:[%s453_s19 + $0x20] sm:$0xff]   ;;  %v1898_v33 = vld [vmem:[%s453_s19 + $0x30] sm:$0xff]   ;;  %v1899_v37 = vld [vmem:[%s453_s19 + $0x38] sm:$0xff]  }
  0x13   : > { %v666_v23 = vunpack.c.l.b16 %v664_v13  ;;  %v1962_v29 = vpack.i.bf16 %v1872_v20, %v1871_v19  ;;  %v1875_v30 = vunpack.c.l.bf16 %v1895_v21  ;;  %v1876_v31 = vunpack.c.h.bf16 %v1895_v21 }
  0x14   : > { %v1951_v28 = vpack.i.bf16 %v1864_v18, %v1863_v17  ;;  %v1956_v34 = vpack.i.bf16 %v1868_v25, %v1867_v24  ;;  %v1879_v35 = vunpack.c.l.bf16 %v1896_v26  ;;  %v1880_v36 = vunpack.c.h.bf16 %v1896_v26 }
  0x15   : > { %v667_v32 = vrot.slane %v666_v23, 7  ;;  %1963 = vperm.xlu1 %1961, %v1962_v29   ;;  %v1967_v39 = vpack.i.bf16 %v1876_v31, %v1875_v30  ;;  %v1883_v40 = vunpack.c.l.bf16 %v1897_v27  ;;  %v1884_v41 = vunpack.c.h.bf16 %v1897_v27 }
  0x16   : > { %1952 = vperm.xlu0 %1950, %v1951_v28   ;;  %v1972_v43 = vpack.i.bf16 %v1880_v36, %v1879_v35  ;;  %v1887_v44 = vunpack.c.l.bf16 %v1898_v33  ;;  %v1888_v45 = vunpack.c.h.bf16 %v1898_v33  ;;  %v1891_v47 = vunpack.c.l.bf16 %v1899_v37 }
  0x17   : > { %v669_v38 = vsel %vm668_vm2, %v667_v32, %v665_v22  ;;  %v1977_v46 = vpack.i.bf16 %v1884_v41, %v1883_v40  ;;  %v1892_v48 = vunpack.c.h.bf16 %v1899_v37 }
  0x18   : > { %v2235_v42 = vpack.c.b16 %v669_v38, %v669_v38  ;;  %v1982_v49 = vpack.i.bf16 %v1888_v45, %v1887_v44 }
  0x19   : > { %1968 = vperm.xlu1 %1961, %v1967_v39   ;;  %v1987_v50 = vpack.i.bf16 %v1892_v48, %v1891_v47 }
  0x1a   : > { %1915 = vmatmul.mubr.msk.bf16.vlgmr.msra.gmra.mrb[0].mxu0 %vm671_vm3, %v2235_v42  ;;  %1957 = vperm.xlu0 %1950, %v1956_v34  }
  0x1b   : > { %1242 = vmatprep.mubr.bf16.mxu0 %v2131_v7 }
  0x1d   : > { %1978 = vperm.xlu1 %1961, %v1977_v46  }
  0x1e   : > { %1973 = vperm.xlu0 %1950, %v1972_v43  }
  0x21   : > { %1988 = vperm.xlu1 %1961, %v1987_v50  }
  0x22   : > { %1983 = vperm.xlu0 %1950, %v1982_v49  }
  0x94   : > { %v1964_v54 = vpop.permute.xlu1 %1963 }
  0x95   : > { %v1953_v51 = vpop.permute.xlu0 %1952  ;;  %v1965_v57 = vunpack.i.l.bf16 %v1964_v54  ;;  %v1966_v19 = vunpack.i.h.bf16 %v1964_v54 }
  0x96   : > { %v1955_v52 = vunpack.i.h.bf16 %v1953_v51  ;;  %v1954_v53 = vunpack.i.l.bf16 %v1953_v51 }
  0x97   : > { %v590_v11 = vmul.f32 %v1965_v57, %v2243_v55  ;;  %v591_v30 = vmul.f32 %v1966_v19, %v2243_v55 }
  0x98   : > { %v587_v60 = vmul.f32 %v1955_v52, %v2243_v55  ;;  %v586_v61 = vmul.f32 %v1954_v53, %v2243_v55  ;;  %v1969_v4 = vpop.permute.xlu1 %1968 }
  0x99   : > { %v1958_v58 = vpop.permute.xlu0 %1957  ;;  %v1970_v13 = vunpack.i.l.bf16 %v1969_v4  ;;  %v613_v22 = vadd.f32 %v2253_v3, %v590_v11  ;;  %v1971_v31 = vunpack.i.h.bf16 %v1969_v4  ;;  %v614_v41 = vadd.f32 %v2253_v3, %v591_v30 }
  0x9a   : > { %v1959_v62 = vunpack.i.l.bf16 %v1958_v58  ;;  %v1960_v12 = vunpack.i.h.bf16 %v1958_v58  ;;  %v610_v16 = vadd.f32 %v2253_v3, %v587_v60  ;;  %v609_v17 = vadd.f32 %v2253_v3, %v586_v61 }
  0x9b   : > { %v592_v21 = vmul.f32 %v1970_v13, %v2243_v55  ;;  %v593_v39 = vmul.f32 %v1971_v31, %v2243_v55 }
  0x9c   : > { %v588_v14 = vmul.f32 %v1959_v62, %v2243_v55  ;;  %v589_v20 = vmul.f32 %v1960_v12, %v2243_v55  ;;  %v1979_v29 = vpop.permute.xlu1 %1978 }
  0x9d   : > { %v1974_v27 = vpop.permute.xlu0 %1973  ;;  %v1980_v32 = vunpack.i.l.bf16 %v1979_v29  ;;  %v615_v37 = vadd.f32 %v2253_v3, %v592_v21  ;;  %v1981_v51 = vunpack.i.h.bf16 %v1979_v29  ;;  %v616_v52 = vadd.f32 %v2253_v3, %v593_v39 }
  0x9e   : > { %v611_v26 = vadd.f32 %v2253_v3, %v588_v14  ;;  %v1975_v28 = vunpack.i.l.bf16 %v1974_v27  ;;  %v612_v33 = vadd.f32 %v2253_v3, %v589_v20  ;;  %v1976_v48 = vunpack.i.h.bf16 %v1974_v27 }
  0x9f   : > { %v596_v44 = vmul.f32 %v1980_v32, %v2243_v55  ;;  %v597_v60 = vmul.f32 %v1981_v51, %v2243_v55 }
  0xa0   : > { %v594_v38 = vmul.f32 %v1975_v28, %v2243_v55  ;;  %v1989_v47 = vpop.permute.xlu1 %1988  ;;  %v595_v58 = vmul.f32 %v1976_v48, %v2243_v55 }
  0xa1   : > { %v1984_v40 = vpop.permute.xlu0 %1983  ;;  %v1990_v53 = vunpack.i.l.bf16 %v1989_v47  ;;  %v619_v57 = vadd.f32 %v2253_v3, %v596_v44  ;;  %v620_v13 = vadd.f32 %v2253_v3, %v597_v60 }
  0xa2   : > { %v1985_v49 = vunpack.i.l.bf16 %v1984_v40  ;;  %v617_v50 = vadd.f32 %v2253_v3, %v594_v38  ;;  %v618_v4 = vadd.f32 %v2253_v3, %v595_v58 }
  0xa3   : > { %v600_v61 = vmul.f32 %v1990_v53, %v2243_v55 }
  0xa5   : > { %v623_v12 = vadd.f32 %v2253_v3, %v600_v61 }
  0xed   : > { %v713_v59 = vpop.f32.mrb[0].mxu0 }
  0xee   : > { %v714_v63 = vadd.f32 %v1800_v56, %v713_v59  ;;  %v1916_v0 = vpop.f32.mrb[1].mxu0  ;;  %v598_v59 = vmul.f32 %v1985_v49, %v2243_v55 }
  0xef   : > { %v716_v2 = vpop.f32.mrb[2].mxu0  ;;  %v1986_v0 = vunpack.i.h.bf16 %v1984_v40 }
  0xf0   : > { %v726_v5 = vrot.slane %v714_v63, %v2226_v10  ;;  %v1917_v9 = vpop.f32.mrb[3].mxu0  ;;  %v621_v2 = vadd.f32 %v2253_v3, %v598_v59 }
  0xf1   : > { %v599_v14 = vmul.f32 %v1986_v0, %v2243_v55 }
  0xf2   : > { %v734_v15 = vrot.slane %v726_v5, %v2226_v10  ;;  %v727_v23 = vcombine.high %v726_v5, %v726_v5  ;;  %v1991_v5 = vunpack.i.h.bf16 %v1989_v47 }
  0xf3   : > { %v622_v19 = vadd.f32 %v2253_v3, %v599_v14 }
  0xf4   : > { %v2265_v18 = vrot.slane %v734_v15, %v2257_v8  ;;  %v741_v34 = vrot.slane %v727_v23, %v2226_v10  ;;  %v601_v15 = vmul.f32 %v1991_v5, %v2243_v55  ;;  %v1992_v55 = vld [vmem:[%s2604_s6] sm:$0xff]  }
  0xf5   : > { %1934 = vmatprep.mubr.bf16.mxu1 %v1992_v55 }
  0xf6   : > { %v753_v24 = vmul.f32 %v2265_v18, %v610_v16  ;;  %v752_v25 = vmul.f32 %v2265_v18, %v609_v17  ;;  %v756_v35 = vmul.f32 %v2265_v18, %v613_v22  ;;  %v754_v36 = vmul.f32 %v2265_v18, %v611_v26 }
  0xf7   : > { %v2283_v43 = vrot.slane %v741_v34, %v2257_v8  ;;  %v758_v45 = vmul.f32 %v2265_v18, %v615_v37  ;;  %v755_v46 = vmul.f32 %v2265_v18, %v612_v33  ;;  %v757_v56 = vmul.f32 %v2265_v18, %v614_v41 }
  0xf8   : > { %770 = vadd.xlane.f32.xlu1 %v753_v24  ;;  %768 = vadd.xlane.f32.xlu0 %v752_v25  ;;  %v759_v63 = vmul.f32 %v2265_v18, %v616_v52  ;;  %v624_v21 = vadd.f32 %v2253_v3, %v601_v15 }
  0xf9   : > { %v760_v54 = vmul.f32 %v2283_v43, %v617_v50  ;;  %v762_v62 = vmul.f32 %v2283_v43, %v619_v57  ;;  %v764_v9 = vmul.f32 %v2283_v43, %v621_v2  ;;  %v761_v11 = vmul.f32 %v2283_v43, %v618_v4 }
  0xfa   : > { %v766_v16 = vmul.f32 %v2283_v43, %v623_v12  ;;  %v763_v17 = vmul.f32 %v2283_v43, %v620_v13  ;;  %v765_v20 = vmul.f32 %v2283_v43, %v622_v19  ;;  %v767_v22 = vmul.f32 %v2283_v43, %v624_v21 }
  0xfc   : > { %776 = vadd.xlane.f32.xlu1 %v756_v35  ;;  %772 = vadd.xlane.f32.xlu0 %v754_v36 }
 0x100   : > { %780 = vadd.xlane.f32.xlu1 %v758_v45  ;;  %774 = vadd.xlane.f32.xlu0 %v755_v46  ;;  %v1186_v45 = vld [vmem:[%s2607_s9] sm:$0xff] }
 0x101   : > { %v1823_v47 = vcombine.high %v1186_v45, %v1186_v45  ;;  %v1822_v48 = vcombine.low %v1186_v45, %v1186_v45 }
 0x103   : > { %1824 = vmatprep.subr.msk.bf16.mxu0 %vm675_vm0, %v1823_v47  ;;  %v1205_v52 = vsel %vm675_vm0, %v1822_v48, 0 }
 0x104   : > { %784 = vadd.xlane.f32.xlu1 %v760_v54  ;;  %778 = vadd.xlane.f32.xlu0 %v757_v56 }
 0x105   : > { %1211 = vmatpush1.bf16.msra.mxu0 %v1205_v52 }
 0x108   : > { %788 = vadd.xlane.f32.xlu1 %v762_v62  ;;  %782 = vadd.xlane.f32.xlu0 %v759_v63 }
 0x109   : > { %1825 = vmatmul.mubr.msk.bf16.vlgmr.msra.gmra.mrb[4].mxu0 %vm671_vm3, %v2235_v42 }
 0x10c   : > { %792 = vadd.xlane.f32.xlu1 %v764_v9  ;;  %786 = vadd.xlane.f32.xlu0 %v761_v11 }
 0x110   : > { %796 = vadd.xlane.f32.xlu1 %v766_v16  ;;  %790 = vadd.xlane.f32.xlu0 %v763_v17 }
 0x114   : > { %794 = vadd.xlane.f32.xlu0 %v765_v20 }
 0x118   : > { %798 = vadd.xlane.f32.xlu0 %v767_v22 }
 0x185   : > { %v771_v23 = vpop.xlane.xlu1 %770  ;;  %v769_v24 = vpop.xlane.xlu0 %768 }
 0x186   : > { %v800_v30 = vmul.f32 0.088388346, %v769_v24  ;;  %v801_v34 = vmul.f32 0.088388346, %v771_v23 }
 0x189   : > { %v777_v25 = vpop.xlane.xlu1 %776  ;;  %v773_v26 = vpop.xlane.xlu0 %772 }
 0x18a   : > { %v802_v27 = vmul.f32 0.088388346, %v773_v26  ;;  %v804_v35 = vmul.f32 0.088388346, %v777_v25 }
 0x18c   : > { %v816_v31 = vmax.f32 %v800_v30, %v802_v27 }
 0x18d   : > { %v781_v28 = vpop.xlane.xlu1 %780  ;;  %v775_v29 = vpop.xlane.xlu0 %774 }
 0x18e   : > { %v803_v32 = vmul.f32 0.088388346, %v775_v29  ;;  %v2318_v37 = vmul.f32 0.088388346, %v781_v28  ;;  %v818_v38 = vmax.f32 %v816_v31, %v804_v35 }
 0x190   : > { %v817_v39 = vmax.f32 %v801_v34, %v803_v32  ;;  %v820_v49 = vmax.f32 %v818_v38, %v2318_v37 }
 0x191   : > { %v785_v3 = vpop.xlane.xlu1 %784  ;;  %v779_v33 = vpop.xlane.xlu0 %778 }
 0x192   : > { %v2316_v36 = vmul.f32 0.088388346, %v779_v33  ;;  %v808_v0 = vmul.f32 0.088388346, %v785_v3 }
 0x194   : > { %v819_v41 = vmax.f32 %v817_v39, %v2316_v36 }
 0x195   : > { %v783_v40 = vpop.xlane.xlu0 %782  ;;  %v789_v46 = vpop.xlane.xlu1 %788 }
 0x196   : > { %v2321_v44 = vmul.f32 0.088388346, %v783_v40  ;;  %v2332_v60 = vmul.f32 0.088388346, %v789_v46 }
 0x198   : > { %v821_v50 = vmax.f32 %v819_v41, %v2321_v44  ;;  %v829_v12 = vmax.f32 %v808_v0, %v2332_v60 }
 0x199   : > { %v787_v51 = vpop.xlane.xlu0 %786  ;;  %v793_v56 = vpop.xlane.xlu1 %792 }
 0x19a   : > { %v822_v53 = vmax.f32 %v820_v49, %v821_v50  ;;  %v2336_v2 = vmul.f32 0.088388346, %v793_v56  ;;  %v809_v9 = vmul.f32 0.088388346, %v787_v51 }
 0x19c   : > { %v823_v54 = vrot.slane %v822_v53, 4  ;;  %v831_v17 = vmax.f32 %v829_v12, %v2336_v2 }
 0x19d   : > { %v791_v57 = vpop.xlane.xlu0 %790  ;;  %v797_v4 = vpop.xlane.xlu1 %796 }
 0x19e   : > { %v824_v58 = vmax.f32 %v822_v53, %v823_v54  ;;  %v2334_v63 = vmul.f32 0.088388346, %v791_v57  ;;  %v2341_v14 = vmul.f32 0.088388346, %v797_v4 }
 0x1a0   : > { %v825_v59 = vrot.slane %v824_v58, 2  ;;  %v830_v15 = vmax.f32 %v809_v9, %v2334_v63  ;;  %v833_v25 = vmax.f32 %v831_v17, %v2341_v14 }
 0x1a1   : > { %v795_v61 = vpop.xlane.xlu0 %794 }
 0x1a2   : > { %v826_v62 = vmax.f32 %v824_v58, %v825_v59  ;;  %v2338_v11 = vmul.f32 0.088388346, %v795_v61 }
 0x1a4   : > { %v827_v5 = vrot.slane %v826_v62, 1  ;;  %v832_v22 = vmax.f32 %v830_v15, %v2338_v11 }
 0x1a5   : > { %v799_v13 = vpop.xlane.xlu0 %798 }
 0x1a6   : > { %v828_v42 = vmax.f32 %v826_v62, %v827_v5  ;;  %v2344_v16 = vmul.f32 0.088388346, %v799_v13 }
 0x1a8   : > { %v842_v19 = vsub.f32 %v800_v30, %v828_v42  ;;  %v843_v20 = vsub.f32 %v801_v34, %v828_v42  ;;  %v844_v21 = vsub.f32 %v802_v27, %v828_v42  ;;  %v845_v55 = vsub.f32 %v803_v32, %v828_v42 }
 0x1a9   : > { %v834_v26 = vmax.f32 %v832_v22, %v2344_v16  ;;  %v846_v28 = vsub.f32 %v804_v35, %v828_v42  ;;  %v847_v3 = vsub.f32 %v2316_v36, %v828_v42  ;;  %v848_v27 = vsub.f32 %v2318_v37, %v828_v42 }
 0x1aa   : > { %v858_v23 = vmul.f32 1.442695, %v842_v19  ;;  %v860_v24 = vmul.f32 1.442695, %v843_v20  ;;  %v862_v29 = vmul.f32 1.442695, %v844_v21  ;;  %v849_v38 = vsub.f32 %v2321_v44, %v828_v42 }
 0x1ab   : > { %v835_v31 = vmax.f32 %v833_v25, %v834_v26  ;;  %v864_v33 = vmul.f32 1.442695, %v845_v55  ;;  %v866_v34 = vmul.f32 1.442695, %v846_v28  ;;  %v868_v39 = vmul.f32 1.442695, %v847_v3 }
 0x1ac   : > { %2068 = vpow2.f32 %v858_v23  ;;  %v870_v35 = vmul.f32 1.442695, %v848_v27  ;;  %v872_v45 = vmul.f32 1.442695, %v849_v38 }
 0x1ad   : > { %2070 = vpow2.f32 %v860_v24  ;;  %v836_v30 = vrot.slane %v835_v31, 4 }
 0x1ae   : > { %2072 = vpow2.f32 %v862_v29 }
 0x1af   : > { %v837_v32 = vmax.f32 %v835_v31, %v836_v30  ;;  %2074 = vpow2.f32 %v864_v33 }
 0x1b0   : > { %2076 = vpow2.f32 %v866_v34 }
 0x1b1   : > { %v838_v40 = vrot.slane %v837_v32, 2  ;;  %2078 = vpow2.f32 %v868_v39 }
 0x1b2   : > { %2080 = vpow2.f32 %v870_v35 }
 0x1b3   : > { %v839_v41 = vmax.f32 %v837_v32, %v838_v40  ;;  %2082 = vpow2.f32 %v872_v45 }
 0x1b5   : > { %v840_v36 = vrot.slane %v839_v41, 1 }
 0x1b6   : > { %v2353_v46 = vpop.eup %2068 }
 0x1b7   : > { %v2355_v47 = vpop.eup %2070  ;;  %v841_v48 = vmax.f32 %v839_v41, %v840_v36 }
 0x1b8   : > { %v890_v37 = vadd.f32 %v2355_v47, %v2353_v46  ;;  %v2359_v49 = vpop.eup %2072 }
 0x1b9   : > { %v850_v50 = vsub.f32 %v808_v0, %v841_v48  ;;  %v851_v51 = vsub.f32 %v809_v9, %v841_v48  ;;  %v852_v52 = vsub.f32 %v2332_v60, %v841_v48  ;;  %v2075_v53 = vpop.eup %2074  ;;  %v853_v54 = vsub.f32 %v2334_v63, %v841_v48 }
 0x1ba   : > { %v891_v44 = vadd.f32 %v2359_v49, %v890_v37  ;;  %v2077_v59 = vpop.eup %2076  ;;  %v854_v61 = vsub.f32 %v2336_v2, %v841_v48  ;;  %v855_v12 = vsub.f32 %v2338_v11, %v841_v48  ;;  %v856_v60 = vsub.f32 %v2341_v14, %v841_v48 }
 0x1bb   : > { %v874_v57 = vmul.f32 1.442695, %v850_v50  ;;  %v876_v58 = vmul.f32 1.442695, %v851_v51  ;;  %v878_v62 = vmul.f32 1.442695, %v852_v52  ;;  %v2079_v5 = vpop.eup %2078  ;;  %v857_v17 = vsub.f32 %v2344_v16, %v841_v48 }
 0x1bc   : > { %v892_v56 = vadd.f32 %v2075_v53, %v891_v44  ;;  %v880_v0 = vmul.f32 1.442695, %v853_v54  ;;  %v2081_v13 = vpop.eup %2080  ;;  %v882_v63 = vmul.f32 1.442695, %v854_v61  ;;  %v884_v2 = vmul.f32 1.442695, %v855_v12 }
 0x1bd   : > { %2084 = vpow2.f32 %v874_v57  ;;  %v2083_v15 = vpop.eup %2082  ;;  %v886_v20 = vmul.f32 1.442695, %v856_v60  ;;  %v888_v11 = vmul.f32 1.442695, %v857_v17 }
 0x1be   : > { %v893_v4 = vadd.f32 %v2077_v59, %v892_v56  ;;  %2086 = vpow2.f32 %v876_v58 }
 0x1bf   : > { %2088 = vpow2.f32 %v878_v62 }
 0x1c0   : > { %v894_v9 = vadd.f32 %v2079_v5, %v893_v4  ;;  %2090 = vpow2.f32 %v880_v0 }
 0x1c1   : > { %2092 = vpow2.f32 %v882_v63 }
 0x1c2   : > { %v895_v42 = vadd.f32 %v2081_v13, %v894_v9  ;;  %2094 = vpow2.f32 %v884_v2 }
 0x1c3   : > { %2096 = vpow2.f32 %v886_v20 }
 0x1c4   : > { %v896_v19 = vadd.f32 %v2083_v15, %v895_v42  ;;  %2098 = vpow2.f32 %v888_v11 }
 0x1c6   : > { %v897_v21 = vrot.slane %v896_v19, 4 }
 0x1c7   : > { %v2085_v22 = vpop.eup %2084 }
 0x1c8   : > { %v898_v55 = vadd.f32 %v897_v21, %v896_v19  ;;  %v2087_v23 = vpop.eup %2086 }
 0x1c9   : > { %v903_v14 = vadd.f32 %v2087_v23, %v2085_v22  ;;  %v2089_v25 = vpop.eup %2088 }
 0x1ca   : > { %v899_v24 = vrot.slane %v898_v55, 2  ;;  %v2091_v29 = vpop.eup %2090 }
 0x1cb   : > { %v904_v28 = vadd.f32 %v2089_v25, %v903_v14  ;;  %v2093_v3 = vpop.eup %2092 }
 0x1cc   : > { %v900_v26 = vadd.f32 %v899_v24, %v898_v55  ;;  %v2095_v27 = vpop.eup %2094 }
 0x1cd   : > { %v905_v31 = vadd.f32 %v2091_v29, %v904_v28  ;;  %v2097_v32 = vpop.eup %2096 }
 0x1ce   : > { %v901_v16 = vrot.slane %v900_v26, 1  ;;  %v2099_v39 = vpop.eup %2098 }
 0x1cf   : > { %v906_v30 = vadd.f32 %v2093_v3, %v905_v31  ;;  %v1996_v31 = vld [vmem:[%s2605_s7 + $0x4] ss:$8 sps:$4 sm:$0xff]  }
 0x1d0   : > { %v902_v33 = vadd.f32 %v901_v16, %v900_v26 }
 0x1d1   : > { %v907_v34 = vadd.f32 %v2095_v27, %v906_v30  ;;  %v1997_v30 = vld [vmem:[%s2605_s7 + $0x10] ss:$8 sps:$4 sm:$0xff]  }
 0x1d2   : > { %2100 = vrcp.f32 %v902_v33  ;;  %v1994_v33 = vld [vmem:[%s2605_s7] ss:$8 sps:$4 sm:$0xff]  }
 0x1d3   : > { %v908_v38 = vadd.f32 %v2097_v32, %v907_v34  ;;  %v2000_v34 = vld [vmem:[%s2605_s7 + $0x20] ss:$8 sps:$4 sm:$0xff]  }
 0x1d5   : > { %v909_v40 = vadd.f32 %v2099_v39, %v908_v38  ;;  %v2003_v38 = vld [vmem:[%s2605_s7 + $0x30] ss:$8 sps:$4 sm:$0xff]  }
 0x1d7   : > { %v910_v35 = vrot.slane %v909_v40, 4 }
 0x1d9   : > { %v911_v41 = vadd.f32 %v910_v35, %v909_v40  ;;  %v2006_v40 = vld [vmem:[%s2605_s7 + $0x40] ss:$8 sps:$4 sm:$0xff]   ;;  %v2012_v35 = vld [vmem:[%s2605_s7 + $0x54] ss:$8 sps:$4 sm:$0xff]  }
 0x1db   : > { %v912_v36 = vrot.slane %v911_v41, 2 }
 0x1dc   : > { %v2101_v45 = vpop.eup %2100 }
 0x1dd   : > { %v917_v37 = vmul.f32 %v2101_v45, %v2353_v46  ;;  %v918_v48 = vmul.f32 %v2101_v45, %v2355_v47  ;;  %v919_v44 = vmul.f32 %v2101_v45, %v2359_v49  ;;  %v920_v50 = vmul.f32 %v2101_v45, %v2075_v53 }
 0x1de   : > { %v913_v51 = vadd.f32 %v912_v36, %v911_v41  ;;  %v921_v52 = vmul.f32 %v2101_v45, %v2077_v59  ;;  %v922_v54 = vmul.f32 %v2101_v45, %v2079_v5  ;;  %v923_v46 = vmul.f32 %v2101_v45, %v2081_v13  ;;  %v2010_v41 = vld [vmem:[%s2605_s7 + $0x50] ss:$8 sps:$4 sm:$0xff]   ;;  %v2014_v36 = vld [vmem:[%s2605_s7 + $0x60] ss:$8 sps:$4 sm:$0xff]  }
 0x1df   : > { %v934_v56 = vmul.f32 %v917_v37, %v2265_v18  ;;  %v935_v57 = vmul.f32 %v918_v48, %v2265_v18  ;;  %v936_v58 = vmul.f32 %v919_v44, %v2265_v18  ;;  %v937_v61 = vmul.f32 %v920_v50, %v2265_v18  ;;  %v2017_v37 = vld [vmem:[%s2605_s7 + $0x70] ss:$8 sps:$4 sm:$0xff]   ;;  %v2019_v48 = vld [vmem:[%s2605_s7 + $0x74] ss:$8 sps:$4 sm:$0xff]   ;;  %v1187_v44 = vld [vmem:[%s2608_s10] sm:$0x3] }
 0x1e0   : > { %v914_v62 = vrot.slane %v913_v51, 1  ;;  %v938_v49 = vmul.f32 %v921_v52, %v2265_v18  ;;  %v939_v53 = vmul.f32 %v922_v54, %v2265_v18  ;;  %v924_v59 = vmul.f32 %v2101_v45, %v2083_v15  ;;  %v2016_v45 = vld [vmem:[%s2605_s7 + $0x64] ss:$8 sps:$4 sm:$0xff]   ;;  %v1244_v54 = vpop.f32.mrb[4].mxu0 }
 0x1e1   : > { %v954_v4 = vpack.c.bf16 %v935_v57, %v934_v56  ;;  %v955_v47 = vpack.c.bf16 %v937_v61, %v936_v58  ;;  %v940_v0 = vmul.f32 %v923_v46, %v2265_v18  ;;  %v2443_v50 = vsub.s32 1, %v2215_v6  ;;  %v1246_v57 = vpop.f32.mrb[5].mxu0 }
 0x1e2   : > { %v915_v12 = vadd.f32 %v914_v62, %v913_v51  ;;  %v956_v5 = vpack.c.bf16 %v939_v53, %v938_v49  ;;  %v941_v9 = vmul.f32 %v924_v59, %v2265_v18  ;;  %v1192_v51 = vrot.slane %v1187_v44, %v2257_v8  ;;  %v1248_v61 = vpop.f32.mrb[6].mxu0 }
 0x1e3   : > { %1918 = vmatprep.subr.bf16.mxu1 %v954_v4  ;;  %v1196_v52 = vrot.slane %v1187_v44, %v2443_v50  ;;  %v1249_v62 = vpop.f32.mrb[7].mxu0  ;;  %v2026_v44 = vld [vmem:[%s2609_s11 + $0x20] ss:$8 sps:$4 sm:$0xff]   ;;  %v2040_v61 = vld [vmem:[%s2609_s11 + $0x64] ss:$8 sps:$4 sm:$0xff]  }
 0x1e4   : > { %2102 = vrcp.f32 %v915_v12  ;;  %1919 = vmatpush3.bf16.msra.mxu1 %v954_v4  ;;  %v957_v60 = vpack.c.bf16 %v941_v9, %v940_v0  ;;  %v1245_v56 = vadd.f32 %v1244_v54, %v1192_v51  ;;  %v2031_v51 = vld [vmem:[%s2609_s11 + $0x34] ss:$8 sps:$4 sm:$0xff]   ;;  %v2034_v54 = vld [vmem:[%s2609_s11 + $0x44] ss:$8 sps:$4 sm:$0xff]   ;;  %v2038_v62 = vld [vmem:[%s2609_s11 + $0x60] ss:$8 sps:$4 sm:$0xff]  }
 0x1e5   : > { %1920 = vmatprep.subr.bf16.mxu1 %v955_v47  ;;  %v1247_v58 = vadd.f32 %v1246_v57, %v1196_v52  ;;  %v2029_v52 = vld [vmem:[%s2609_s11 + $0x30] ss:$8 sps:$4 sm:$0xff]   ;;  %v2037_v57 = vld [vmem:[%s2609_s11 + $0x54] ss:$8 sps:$4 sm:$0xff]  }
 0x1e7   : > { %v1253_v4 = vcombine.low %v1245_v56, %v1247_v58  ;;  %v2032_v56 = vld [vmem:[%s2609_s11 + $0x40] ss:$8 sps:$4 sm:$0xff]   ;;  %v2035_v58 = vld [vmem:[%s2609_s11 + $0x50] ss:$8 sps:$4 sm:$0xff]  }
 0x1e8   : > { %1921 = vmatpush3.bf16.msra.mxu1 %v955_v47 }
 0x1e9   : > { %1922 = vmatprep.subr.bf16.mxu1 %v956_v5  ;;  %v1260_v6 = vrot.slane %v1253_v4, %v2226_v10  ;;  %v2043_v4 = vld [vmem:[%s2609_s11 + $0x74] ss:$8 sps:$4 sm:$0xff]  }
 0x1eb   : > { %v1268_v0 = vrot.slane %v1260_v6, %v2226_v10 }
 0x1ec   : > { %1923 = vmatpush3.bf16.msra.mxu1 %v956_v5  ;;  %v1041_v5 = vld [vmem:[%s2606_s8] sm:$0x3] }
 0x1ed   : > { %1924 = vmatprep.subr.bf16.mxu1 %v957_v60  ;;  %v1046_v9 = vrot.slane %v1041_v5, %v2257_v8 }
 0x1ee   : > { %v2103_v13 = vpop.eup %2102 }
 0x1ef   : > { %v926_v63 = vmul.f32 %v2103_v13, %v2085_v22  ;;  %v927_v42 = vmul.f32 %v2103_v13, %v2087_v23  ;;  %v928_v17 = vmul.f32 %v2103_v13, %v2089_v25  ;;  %v929_v2 = vmul.f32 %v2103_v13, %v2091_v29 }
 0x1f0   : > { %1925 = vmatpush3.bf16.msra.mxu1 %v957_v60  ;;  %v930_v15 = vmul.f32 %v2103_v13, %v2093_v3  ;;  %v931_v19 = vmul.f32 %v2103_v13, %v2095_v27  ;;  %v932_v24 = vmul.f32 %v2103_v13, %v2097_v32  ;;  %v933_v25 = vmul.f32 %v2103_v13, %v2099_v39  ;;  %v1993_v3 = vld [vmem:[%s2604_s6 + $0x8] sm:$0xff]   ;;  %v2005_v32 = vld [vmem:[%s2605_s7 + $0x34] ss:$8 sps:$4 sm:$0xff]  }
 0x1f1   : > { %v942_v20 = vmul.f32 %v926_v63, %v2283_v43  ;;  %v943_v21 = vmul.f32 %v927_v42, %v2283_v43  ;;  %v944_v11 = vmul.f32 %v928_v17, %v2283_v43  ;;  %v945_v18 = vmul.f32 %v929_v2, %v2283_v43  ;;  %v2002_v27 = vld [vmem:[%s2605_s7 + $0x24] ss:$8 sps:$4 sm:$0xff]  }
 0x1f2   : > { %v946_v22 = vmul.f32 %v930_v15, %v2283_v43  ;;  %v947_v23 = vmul.f32 %v931_v19, %v2283_v43  ;;  %v948_v28 = vmul.f32 %v932_v24, %v2283_v43  ;;  %v949_v29 = vmul.f32 %v933_v25, %v2283_v43  ;;  %v1999_v43 = vld [vmem:[%s2605_s7 + $0x14] ss:$8 sps:$4 sm:$0xff]   ;;  %v2008_v39 = vld [vmem:[%s2605_s7 + $0x44] ss:$8 sps:$4 sm:$0xff]  }
 0x1f3   : > { %v958_v55 = vpack.c.bf16 %v943_v21, %v942_v20  ;;  %v959_v14 = vpack.c.bf16 %v945_v18, %v944_v11  ;;  %v1050_v60 = vrot.slane %v1041_v5, %v2443_v50  ;;  %v1261_v13 = vcombine.high %v1260_v6, %v1260_v6  ;;  %v2050_v6 = vld [vmem:[%s2609_s11 + $0xa0] ss:$8 sps:$4 sm:$0xff]   ;;  %v2055_v5 = vld [vmem:[%s2609_s11 + $0xb4] ss:$8 sps:$4 sm:$0xff]  }
 0x1f4   : > { %v960_v26 = vpack.c.bf16 %v947_v23, %v946_v22  ;;  %v961_v16 = vpack.c.bf16 %v949_v29, %v948_v28  ;;  %v2456_v63 = vrot.slane %v1268_v0, %v2257_v8  ;;  %v2459_v42 = vrot.slane %v1268_v0, %v2443_v50  ;;  %v2053_v0 = vld [vmem:[%s2609_s11 + $0xb0] ss:$8 sps:$4 sm:$0xff]  }
 0x1f5   : > { %1926 = vmatprep.subr.bf16.mxu1 %v958_v55  ;;  %v1275_v20 = vrot.slane %v1261_v13, %v2226_v10  ;;  %v2061_v13 = vld [vmem:[%s2609_s11 + $0xd4] ss:$8 sps:$4 sm:$0xff]  }
 0x1f6   : > { %1927 = vmatpush3.bf16.msra.mxu1 %v958_v55 }
 0x1f7   : > { %1928 = vmatprep.subr.bf16.mxu1 %v959_v14  ;;  %v2467_v25 = vrot.slane %v1275_v20, %v2257_v8  ;;  %v2470_v28 = vrot.slane %v1275_v20, %v2443_v50 }
 0x1fa   : > { %1929 = vmatpush3.bf16.msra.mxu1 %v959_v14 }
 0x1fb   : > { %1930 = vmatprep.subr.bf16.mxu1 %v960_v26 }
 0x1fe   : > { %1931 = vmatpush3.bf16.msra.mxu1 %v960_v26 }
 0x1ff   : > { %1932 = vmatprep.subr.bf16.mxu1 %v961_v16 }
 0x202   : > { %1933 = vmatpush3.bf16.msra.mxu1 %v961_v16 }
 0x203   : > { %1133 = vmatprep.subr.bf16.mxu1 %v1996_v31 }
 0x205   : > { %1935 = vmatmul.mubr.bf16.vlgmr.msra.gmra.mrb[0].mxu1 %v1993_v3 }
 0x206   : > { %1134 = vmatpush1.bf16.msra.mxu1 %v1994_v33  ;;  %1165 = vmatprep.mubr.bf16.mxu1 %v2131_v7 }
 0x207   : > { %1135 = vmatprep.subr.bf16.mxu1 %v1999_v43 }
 0x20a   : > { %1136 = vmatpush1.bf16.msra.mxu1 %v1997_v30 }
 0x20b   : > { %1137 = vmatprep.subr.bf16.mxu1 %v2002_v27 }
 0x20e   : > { %1138 = vmatpush1.bf16.msra.mxu1 %v2000_v34 }
 0x20f   : > { %1139 = vmatprep.subr.bf16.mxu1 %v2005_v32 }
 0x212   : > { %1140 = vmatpush1.bf16.msra.mxu1 %v2003_v38 }
 0x213   : > { %1141 = vmatprep.subr.bf16.mxu1 %v2008_v39 }
 0x216   : > { %1142 = vmatpush1.bf16.msra.mxu1 %v2006_v40 }
 0x217   : > { %1143 = vmatprep.subr.bf16.mxu1 %v2012_v35 }
 0x21a   : > { %1144 = vmatpush1.bf16.msra.mxu1 %v2010_v41  ;;  %v2022_v41 = vld [vmem:[%s2609_s11 + $0x4] ss:$8 sps:$4 sm:$0xff]  }
 0x21b   : > { %1145 = vmatprep.subr.bf16.mxu1 %v2016_v45  ;;  %v2020_v45 = vld [vmem:[%s2609_s11] ss:$8 sps:$4 sm:$0xff]   ;;  %1629 = vmatprep.subr.bf16.mxu0 %v2022_v41 }
 0x21c   : > { %1630 = vmatpush1.bf16.msra.mxu0 %v2020_v45 }
 0x21e   : > { %1146 = vmatpush1.bf16.msra.mxu1 %v2014_v36  ;;  %v2025_v36 = vld [vmem:[%s2609_s11 + $0x14] ss:$8 sps:$4 sm:$0xff]  }
 0x21f   : > { %1147 = vmatprep.subr.bf16.mxu1 %v2019_v48  ;;  %1631 = vmatprep.subr.bf16.mxu0 %v2025_v36  ;;  %v2028_v48 = vld [vmem:[%s2609_s11 + $0x24] ss:$8 sps:$4 sm:$0xff]  }
 0x222   : > { %1148 = vmatpush1.bf16.msra.mxu1 %v2017_v37  ;;  %v2023_v37 = vld [vmem:[%s2609_s11 + $0x10] ss:$8 sps:$4 sm:$0xff]  }
 0x223   : > { %1632 = vmatpush1.bf16.msra.mxu0 %v2023_v37 }
 0x224   : > { %1633 = vmatprep.subr.bf16.mxu0 %v2028_v48 }
 0x227   : > { %1634 = vmatpush1.bf16.msra.mxu0 %v2026_v44 }
 0x228   : > { %1635 = vmatprep.subr.bf16.mxu0 %v2031_v51 }
 0x22b   : > { %1636 = vmatpush1.bf16.msra.mxu0 %v2029_v52 }
 0x22c   : > { %1637 = vmatprep.subr.bf16.mxu0 %v2034_v54 }
 0x22f   : > { %1638 = vmatpush1.bf16.msra.mxu0 %v2032_v56 }
 0x230   : > { %1639 = vmatprep.subr.bf16.mxu0 %v2037_v57 }
 0x233   : > { %1640 = vmatpush1.bf16.msra.mxu0 %v2035_v58 }
 0x234   : > { %1641 = vmatprep.subr.bf16.mxu0 %v2040_v61 }
 0x237   : > { %1642 = vmatpush1.bf16.msra.mxu0 %v2038_v62 }
 0x238   : > { %1643 = vmatprep.subr.bf16.mxu0 %v2043_v4 }
 0x2d8   : > { %v1936_v12 = vpop.f32.mrb[0].mxu1 }
 0x2d9   : > { %v1008_v46 = vpop.f32.mrb[1].mxu1 }
 0x2da   : > { %v1937_v47 = vpop.f32.mrb[2].mxu1 }
 0x2db   : > { %v1024_v49 = vpack.c.bf16 %v1937_v47, %v1936_v12  ;;  %v1011_v53 = vpop.f32.mrb[3].mxu1  ;;  %v2041_v12 = vld [vmem:[%s2609_s11 + $0x70] ss:$8 sps:$4 sm:$0xff]   ;;  %v2044_v47 = vld [vmem:[%s2609_s11 + $0x80] ss:$8 sps:$4 sm:$0xff]  }
 0x2dc   : > { %v1023_v59 = vpack.c.bf16 %v1011_v53, %v1008_v46  ;;  %1644 = vmatpush1.bf16.msra.mxu0 %v2041_v12  ;;  %v2046_v46 = vld [vmem:[%s2609_s11 + $0x84] ss:$8 sps:$4 sm:$0xff]   ;;  %v2047_v53 = vld [vmem:[%s2609_s11 + $0x90] ss:$8 sps:$4 sm:$0xff]  }
 0x2dd   : > { %1645 = vmatprep.subr.bf16.mxu0 %v2046_v46 }
 0x2de   : > { %1166 = vmatmul.mubr.bf16.vlgmr.msra.gmra.mrb[4].mxu1 %v1023_v59  ;;  %v2052_v59 = vld [vmem:[%s2609_s11 + $0xa4] ss:$8 sps:$4 sm:$0xff]  }
 0x2df   : > { %1175 = vmatprep.mubr.bf16.mxu1 %v2131_v7 }
 0x2e0   : > { %1646 = vmatpush1.bf16.msra.mxu0 %v2044_v47 }
 0x2e6   : > { %1176 = vmatmul.mubr.bf16.gmra.mrb[8].mxu1 %v1024_v49  ;;  %v2049_v49 = vld [vmem:[%s2609_s11 + $0x94] ss:$8 sps:$4 sm:$0xff]  }
 0x2e7   : > { %1647 = vmatprep.subr.bf16.mxu0 %v2049_v49 }
 0x2e8   : > { %1648 = vmatpush1.bf16.msra.mxu0 %v2047_v53 }
 0x2e9   : > { %1649 = vmatprep.subr.bf16.mxu0 %v2052_v59 }
 0x2ec   : > { %1650 = vmatpush1.bf16.msra.mxu0 %v2050_v6 }
 0x2ed   : > { %1651 = vmatprep.subr.bf16.mxu0 %v2055_v5 }
 0x2f0   : > { %1652 = vmatpush1.bf16.msra.mxu0 %v2053_v0 }
 0x3b1   : > { %v1167_v7 = vpop.f32.mrb[4].mxu1 }
 0x3b2   : > { %v1168_v17 = vadd.f32 %v1167_v7, %v1046_v9  ;;  %v1169_v2 = vpop.f32.mrb[5].mxu1  ;;  %v2059_v7 = vld [vmem:[%s2609_s11 + $0xd0] ss:$8 sps:$4 sm:$0xff]  }
 0x3b3   : > { %v1170_v15 = vadd.f32 %v1169_v2, %v1050_v60  ;;  %v1171_v19 = vpop.f32.mrb[6].mxu1  ;;  %v2062_v2 = vld [vmem:[%s2609_s11 + $0xe0] ss:$8 sps:$4 sm:$0xff]  }
 0x3b4   : > { %v1296_v21 = vmul.f32 %v2456_v63, %v1168_v17  ;;  %v1172_v11 = vadd.f32 %v1171_v19, %v1046_v9  ;;  %v1173_v18 = vpop.f32.mrb[7].mxu1  ;;  %v2064_v17 = vld [vmem:[%s2609_s11 + $0xe4] ss:$8 sps:$4 sm:$0xff]   ;;  %v2065_v19 = vld [vmem:[%s2609_s11 + $0xf0] ss:$8 sps:$4 sm:$0xff]  }
 0x3b5   : > { %v1297_v55 = vmul.f32 %v2459_v42, %v1170_v15  ;;  %v1174_v24 = vadd.f32 %v1173_v18, %v1050_v60  ;;  %v2067_v15 = vld [vmem:[%s2609_s11 + $0xf4] ss:$8 sps:$4 sm:$0xff]  }
 0x3b6   : > { %v1298_v14 = vmul.f32 %v2456_v63, %v1172_v11 }
 0x3b7   : > { %v1299_v22 = vmul.f32 %v2459_v42, %v1174_v24  ;;  %v1304_v23 = vadd.f32 %v1297_v55, %v1296_v21 }
 0x3b9   : > { %v1177_v26 = vpop.f32.mrb[8].mxu1  ;;  %1305 = vadd.xlane.f32.xlu1 %v1304_v23  ;;  %v1307_v29 = vadd.f32 %v1299_v22, %v1298_v14 }
 0x3ba   : > { %v1178_v16 = vadd.f32 %v1177_v26, %v1046_v9  ;;  %v1179_v31 = vpop.f32.mrb[9].mxu1 }
 0x3bb   : > { %v1180_v3 = vadd.f32 %v1179_v31, %v1050_v60  ;;  %v1181_v33 = vpop.f32.mrb[10].mxu1  ;;  %1308 = vadd.xlane.f32.xlu0 %v1307_v29 }
 0x3bc   : > { %v1300_v43 = vmul.f32 %v2467_v25, %v1178_v16  ;;  %v1182_v30 = vadd.f32 %v1181_v33, %v1046_v9  ;;  %v1183_v27 = vpop.f32.mrb[11].mxu1  ;;  %v2058_v9 = vld [vmem:[%s2609_s11 + $0xc4] ss:$8 sps:$4 sm:$0xff]  }
 0x3bd   : > { %v1301_v34 = vmul.f32 %v2470_v28, %v1180_v3  ;;  %v1184_v32 = vadd.f32 %v1183_v27, %v1050_v60  ;;  %v2056_v60 = vld [vmem:[%s2609_s11 + $0xc0] ss:$8 sps:$4 sm:$0xff]   ;;  %1653 = vmatprep.subr.bf16.mxu0 %v2058_v9 }
 0x3be   : > { %v1302_v38 = vmul.f32 %v2467_v25, %v1182_v30  ;;  %1654 = vmatpush1.bf16.msra.mxu0 %v2056_v60 }
 0x3bf   : > { %v1303_v39 = vmul.f32 %v2470_v28, %v1184_v32  ;;  %v1310_v40 = vadd.f32 %v1301_v34, %v1300_v43  ;;  %1655 = vmatprep.subr.bf16.mxu0 %v2061_v13 }
 0x3c1   : > { %1311 = vadd.xlane.f32.xlu1 %v1310_v40  ;;  %v1313_v35 = vadd.f32 %v1303_v39, %v1302_v38 }
 0x3c2   : > { %1656 = vmatpush1.bf16.msra.mxu0 %v2059_v7 }
 0x3c3   : > { %1314 = vadd.xlane.f32.xlu0 %v1313_v35  ;;  %1657 = vmatprep.subr.bf16.mxu0 %v2064_v17 }
 0x3c6   : > { %1658 = vmatpush1.bf16.msra.mxu0 %v2062_v2 }
 0x3c7   : > { %1659 = vmatprep.subr.bf16.mxu0 %v2067_v15 }
 0x3ca   : > { %1660 = vmatpush1.bf16.msra.mxu0 %v2065_v19 }
 0x446   : > { %v1306_v20 = vpop.xlane.xlu1 %1305 }
 0x447   : > { %v1316_v11 = vmul.f32 0.0625, %v1306_v20 }
 0x448   : > { %v1309_v21 = vpop.xlane.xlu0 %1308 }
 0x449   : > { %v1317_v18 = vmul.f32 0.0625, %v1309_v21 }
 0x44b   : > { %v1320_v55 = vmax.f32 %v1316_v11, %v1317_v18 }
 0x44d   : > { %v1321_v24 = vrot.slane %v1320_v55, 4 }
 0x44e   : > { %v1312_v14 = vpop.xlane.xlu1 %1311 }
 0x44f   : > { %v1322_v22 = vmax.f32 %v1320_v55, %v1321_v24  ;;  %v1318_v29 = vmul.f32 0.0625, %v1312_v14 }
 0x450   : > { %v1315_v23 = vpop.xlane.xlu0 %1314 }
 0x451   : > { %v1323_v26 = vrot.slane %v1322_v22, 2  ;;  %v1319_v16 = vmul.f32 0.0625, %v1315_v23 }
 0x453   : > { %v1324_v31 = vmax.f32 %v1322_v22, %v1323_v26  ;;  %v1327_v3 = vmax.f32 %v1318_v29, %v1319_v16 }
 0x455   : > { %v1325_v33 = vrot.slane %v1324_v31, 1  ;;  %v1328_v43 = vrot.slane %v1327_v3, 4 }
 0x457   : > { %v1326_v30 = vmax.f32 %v1324_v31, %v1325_v33  ;;  %v1329_v27 = vmax.f32 %v1327_v3, %v1328_v43 }
 0x459   : > { %v1334_v34 = vsub.f32 %v1316_v11, %v1326_v30  ;;  %v1335_v32 = vsub.f32 %v1317_v18, %v1326_v30  ;;  %v1330_v38 = vrot.slane %v1329_v27, 2 }
 0x45b   : > { %v1338_v39 = vmul.f32 1.442695, %v1334_v34  ;;  %v1340_v40 = vmul.f32 1.442695, %v1335_v32  ;;  %v1331_v35 = vmax.f32 %v1329_v27, %v1330_v38 }
 0x45d   : > { %2104 = vpow2.f32 %v1338_v39  ;;  %v1332_v41 = vrot.slane %v1331_v35, 1 }
 0x45e   : > { %2106 = vpow2.f32 %v1340_v40 }
 0x45f   : > { %v1333_v45 = vmax.f32 %v1331_v35, %v1332_v41 }
 0x461   : > { %v1336_v36 = vsub.f32 %v1318_v29, %v1333_v45  ;;  %v1337_v37 = vsub.f32 %v1319_v16, %v1333_v45 }
 0x463   : > { %v1342_v48 = vmul.f32 1.442695, %v1336_v36  ;;  %v1344_v44 = vmul.f32 1.442695, %v1337_v37 }
 0x465   : > { %2108 = vpow2.f32 %v1342_v48 }
 0x466   : > { %2110 = vpow2.f32 %v1344_v44 }
 0x467   : > { %v2105_v51 = vpop.eup %2104 }
 0x468   : > { %v2107_v52 = vpop.eup %2106 }
 0x469   : > { %v1346_v54 = vadd.f32 %v2107_v52, %v2105_v51 }
 0x46b   : > { %v1347_v56 = vrot.slane %v1346_v54, 4 }
 0x46d   : > { %v1348_v57 = vadd.f32 %v1347_v56, %v1346_v54 }
 0x46f   : > { %v2109_v58 = vpop.eup %2108  ;;  %v1349_v61 = vrot.slane %v1348_v57, 2 }
 0x470   : > { %v2111_v62 = vpop.eup %2110 }
 0x471   : > { %v1350_v4 = vadd.f32 %v1349_v61, %v1348_v57  ;;  %v1353_v12 = vadd.f32 %v2111_v62, %v2109_v58 }
 0x473   : > { %v1351_v46 = vrot.slane %v1350_v4, 1  ;;  %v1354_v47 = vrot.slane %v1353_v12, 4 }
 0x475   : > { %v1352_v49 = vadd.f32 %v1351_v46, %v1350_v4  ;;  %v1355_v53 = vadd.f32 %v1354_v47, %v1353_v12 }
 0x477   : > { %2112 = vrcp.f32 %v1352_v49  ;;  %v1356_v59 = vrot.slane %v1355_v53, 2 }
 0x479   : > { %v1357_v6 = vadd.f32 %v1356_v59, %v1355_v53 }
 0x47b   : > { %v1358_v5 = vrot.slane %v1357_v6, 1 }
 0x47d   : > { %v1359_v0 = vadd.f32 %v1358_v5, %v1357_v6  ;;  %v1443_v5 = vld [vmem:[%s2610_s12] sm:$0x3] }
 0x47f   : > { %2114 = vrcp.f32 %v1359_v0  ;;  %v1448_v0 = vrot.slane %v1443_v5, %v2257_v8 }
 0x481   : > { %v2113_v9 = vpop.eup %2112 }
 0x482   : > { %v1361_v60 = vmul.f32 %v2113_v9, %v2105_v51  ;;  %v1362_v13 = vmul.f32 %v2113_v9, %v2107_v52  ;;  %v1452_v9 = vrot.slane %v1443_v5, %v2443_v50 }
 0x484   : > { %v1366_v7 = vmul.f32 %v1361_v60, %v2456_v63  ;;  %v1368_v17 = vmul.f32 %v1362_v13, %v2456_v63  ;;  %v1369_v2 = vmul.f32 %v1362_v13, %v2459_v42  ;;  %v1367_v15 = vmul.f32 %v1361_v60, %v2459_v42 }
 0x486   : > { %v1374_v19 = vadd.f32 %v1368_v17, %v1366_v7  ;;  %v1381_v20 = vadd.f32 %v1369_v2, %v1367_v15 }
 0x488   : > { %v1382_v21 = vrot.slane %v1381_v20, 4  ;;  %v1375_v11 = vrot.slane %v1374_v19, 4 }
 0x489   : > { %v2115_v18 = vpop.eup %2114 }
 0x48a   : > { %v1364_v55 = vmul.f32 %v2115_v18, %v2109_v58  ;;  %v1365_v24 = vmul.f32 %v2115_v18, %v2111_v62  ;;  %v1383_v14 = vadd.f32 %v1382_v21, %v1381_v20  ;;  %v1376_v22 = vadd.f32 %v1375_v11, %v1374_v19 }
 0x48c   : > { %v1370_v23 = vmul.f32 %v1364_v55, %v2467_v25  ;;  %v1372_v26 = vmul.f32 %v1365_v24, %v2467_v25  ;;  %v1373_v29 = vmul.f32 %v1365_v24, %v2470_v28  ;;  %v1371_v63 = vmul.f32 %v1364_v55, %v2470_v28 }
 0x48d   : > { %v1384_v16 = vrot.slane %v1383_v14, 2  ;;  %v1377_v31 = vrot.slane %v1376_v22, 2 }
 0x48e   : > { %v1388_v42 = vadd.f32 %v1372_v26, %v1370_v23  ;;  %v1395_v3 = vadd.f32 %v1373_v29, %v1371_v63 }
 0x48f   : > { %v1385_v33 = vadd.f32 %v1384_v16, %v1383_v14  ;;  %v1378_v43 = vadd.f32 %v1377_v31, %v1376_v22 }
 0x490   : > { %v1396_v30 = vrot.slane %v1395_v3, 4  ;;  %v1389_v27 = vrot.slane %v1388_v42, 4 }
 0x491   : > { %v1386_v34 = vrot.slane %v1385_v33, 1  ;;  %v1379_v32 = vrot.slane %v1378_v43, 1 }
 0x492   : > { %v1397_v38 = vadd.f32 %v1396_v30, %v1395_v3  ;;  %v1390_v39 = vadd.f32 %v1389_v27, %v1388_v42 }
 0x493   : > { %v1387_v40 = vadd.f32 %v1386_v34, %v1385_v33  ;;  %v1380_v41 = vadd.f32 %v1379_v32, %v1378_v43 }
 0x494   : > { %v1398_v35 = vrot.slane %v1397_v38, 2  ;;  %v1391_v25 = vrot.slane %v1390_v39, 2 }
 0x495   : > { %v1404_v28 = vmul.f32 0.0625, %v1387_v40  ;;  %v1403_v44 = vmul.f32 0.0625, %v1380_v41 }
 0x496   : > { %v1399_v45 = vadd.f32 %v1398_v35, %v1397_v38  ;;  %v1392_v36 = vadd.f32 %v1391_v25, %v1390_v39 }
 0x497   : > { %v1408_v56 = vpack.c.bf16 %v1404_v28, %v1404_v28  ;;  %v1407_v58 = vpack.c.bf16 %v1403_v44, %v1403_v44 }
 0x498   : > { %v1400_v37 = vrot.slane %v1399_v45, 1  ;;  %v1393_v48 = vrot.slane %v1392_v36, 1 }
 0x499   : > { %v1460_v4 = vunpack.c.l.b16 %v1408_v56  ;;  %v1459_v46 = vunpack.c.l.b16 %v1407_v58 }
 0x49a   : > { %v1401_v51 = vadd.f32 %v1400_v37, %v1399_v45  ;;  %v1394_v52 = vadd.f32 %v1393_v48, %v1392_v36 }
 0x49c   : > { %v1406_v54 = vmul.f32 0.0625, %v1401_v51  ;;  %v1405_v57 = vmul.f32 0.0625, %v1394_v52 }
 0x49e   : > { %v1410_v61 = vpack.c.bf16 %v1406_v54, %v1406_v54  ;;  %v1409_v62 = vpack.c.bf16 %v1405_v57, %v1405_v57 }
 0x4a0   : > { %v1462_v12 = vunpack.c.l.b16 %v1410_v61  ;;  %v1461_v47 = vunpack.c.l.b16 %v1409_v62 }
 0x4a2   : > { %v1464_v49 = vsel %vm668_vm2, %v1462_v12, %v1460_v4  ;;  %v1463_v53 = vsel %vm668_vm2, %v1461_v47, %v1459_v46 }
 0x4a3   : > { %v1466_v59 = vpack.c.b16 %v1464_v49, %v1464_v49  ;;  %v1465_v6 = vpack.c.b16 %v1463_v53, %v1463_v53 }
 0x4a5   : > { %1661 = vmatprep.mubr.bf16.mxu0 %v1466_v59 }
 0x4a6   : > { %1662 = vmatmul.mubr.bf16.vlgmr.msra.gmra.mrb[8].mxu0 %v1465_v6 }
 0x579   : > { %v1663_v60 = vpop.f32.mrb[8].mxu0 }
 0x57a   : > { %v1664_v13 = vadd.f32 %v1663_v60, %v1448_v0  ;;  %v1665_v7 = vpop.f32.mrb[9].mxu0 }
 0x57b   : > { %v1666_v17 = vadd.f32 %v1665_v7, %v1452_v9  ;;  %v1667_v2 = vpop.f32.mrb[10].mxu0 }
 0x57c   : > { %v1670_v15 = vmul.f32 %v1664_v13, %v1664_v13  ;;  %v1668_v19 = vpop.f32.mrb[11].mxu0 }
 0x57d   : > { %v1671_v20 = vmul.f32 %v1666_v17, %v1666_v17 }
 0x57e   : > { %v1673_v21 = vsel %vm1672_vm4, %v1670_v15, 0.0 }
 0x57f   : > { %v1674_v11 = vsel %vm1672_vm4, %v1671_v20, 0.0 }
 0x580   : > { %v1675_v18 = vadd.f32 %v1674_v11, %v1673_v21 }
 0x582   : > { %1676 = vadd.xlane.f32.xlu1 %v1675_v18 }
 0x60f   : > { %v1677_v55 = vpop.xlane.xlu1 %1676 }
 0x610   : > { %2116 = vrsqrt.f32 %v1677_v55  ;;  %vm1680_vm5 = vcmp.eq.f32.partialorder %v1677_v55, inf  ;;  %v1683_v50 = vand.u32 2147483648, %v1677_v55  ;;  %vm1682_vm6 = vcmp.eq.f32.partialorder %v1677_v55, 0.0 }
 0x61a   : > { %v2117_v24 = vpop.eup %2116 }
 0x61b   : > { %v1679_v8 = vmul.f32 %v2117_v24, %v1677_v55 }
 0x61d   : > { %v1681_v14 = vsel %vm1680_vm5, %v1677_v55, %v1679_v8 }
 0x61e   : > { %v1684_v22 = vsel %vm1682_vm6, %v1683_v50, %v1681_v14 }
 0x61f   : > { %v1685_v23 = vmax.f32 %v1684_v22, 1e-12 }
 0x621   : > { %2118 = vrcp.f32 %v1685_v23 }
 0x62b   : > { %v2119_v26 = vpop.eup %2118 }
 0x62c   : > { %v1687_v29 = vmul.f32 %v2119_v26, %v1664_v13  ;;  %v1688_v63 = vmul.f32 %v2119_v26, %v1666_v17 }
 0x62e   : > { %v1691_v16 = vcombine.low %v1687_v29, %v1688_v63 }
 0x630   : > { %v1698_v31 = vrot.slane %v1691_v16, %v2226_v10 }
 0x632   : > { %v1699_v42 = vcombine.high %v1698_v31, %v1698_v31  ;;  %v1706_v3 = vrot.slane %v1698_v31, %v2226_v10 }
 0x634   : > { %v1713_v33 = vrot.slane %v1699_v42, %v2226_v10  ;;  %1720 = vst.msk [vmem:[%s464_s17] sm:$0x3] %vm1718_vm7, %v1706_v3 }
 0x636   : > { %1721 = vst.msk [vmem:[%s464_s17 + $0x2] sm:$0x3] %vm1718_vm7, %v1713_v33 }
 0x637 PF: > { %s23_s25 = sadd.s32 1, %s2126_s25  }
 0x638   : > { %p20_p4 = scmp.ge.s32.totalorder %s23_s25, 4  }
 0x63a   :  { %22 = sbr.rel (!%p20_p4) target bundleno = 1 (0x1), region = 105 }

</bundles_post_ra>
